<compile_context>
chip_gen: v7x
topology: tpu7x:2x2x1
jax: 0.10.0
libtpu: 0.0.40
codegen_flags: <defaults>
</compile_context>

<pallas_src>
import jax
import jax.numpy as jnp
from jax import lax
from jax.experimental import pallas as pl
from jax.experimental.pallas import tpu as pltpu


# ----------------------------------------------------------------------------
# Pallas kernels
# ----------------------------------------------------------------------------
def _conv_relu_pool_kernel(p_ref, w_ref, b_ref, o_ref):
    """Fused conv-as-matmul + bias + ReLU + 2x2 maxpool.

    p_ref: (4, F, N*S) bf16 im2col patches, one slab per 2x2-pool phase
           (phase = a*2 + b, a/b = row/col parity of the conv-output
           position).  S = PH*PW is the pooled spatial size; batch and pooled
           spatial are folded together into the lane dimension.
    w_ref: (OC, F) bf16 flattened conv weight (PyTorch OIHW order, OC padded
           to a sublane multiple where applicable).
    b_ref: (OC, 1) f32 bias.
    o_ref: (OC, N*S) f32 pooled activations.
    """
    w = w_ref[...]
    # 4 wide matmuls (one per pooling phase); f32 accumulation on the MXU.
    acc = jnp.dot(w, p_ref[0], preferred_element_type=jnp.float32)
    for phase in range(1, 4):                        # 2x2 maxpool in epilogue
        acc = jnp.maximum(
            acc, jnp.dot(w, p_ref[phase], preferred_element_type=jnp.float32))
    # relu(max(conv) + bias) == pool(relu(conv + bias))  (max/relu commute);
    # epilogue stays in f32 (v5e VPU has no bf16 path).
    o_ref[...] = jnp.maximum(acc + b_ref[...], 0.0).astype(o_ref.dtype)


def _mlp_head_kernel(x_ref, w1_ref, b1_ref, w2_ref, b2_ref, w3_ref, b3_ref,
                     o_ref):
    """fc1 + ReLU + fc2 + ReLU + fc3 fused; bf16 matmul operands, f32 math."""
    h = jnp.dot(x_ref[...], w1_ref[...], preferred_element_type=jnp.float32)
    h = jnp.maximum(h + b1_ref[...], 0.0)
    h = jnp.dot(h.astype(jnp.bfloat16), w2_ref[...],
                preferred_element_type=jnp.float32)
    h = jnp.maximum(h + b2_ref[...], 0.0)
    h = jnp.dot(h.astype(jnp.bfloat16), w3_ref[...],
                preferred_element_type=jnp.float32)
    o_ref[...] = (h + b3_ref[...]).astype(o_ref.dtype)


# ----------------------------------------------------------------------------
# Wrappers
# ----------------------------------------------------------------------------
def conv_relu_pool(x, w_mat, b_col, ksize, *, lhs_spec="NCHW"):
    """maxpool2x2(relu(conv2d(x, w) + b)) via one fused Pallas kernel.

    x: input in `lhs_spec` layout ("NCHW" or "CNHW"), f32.
    w_mat: (OC, C*KH*KW) bf16.  b_col: (OC, 1) f32.
    Returns pooled activations in "CNHW" layout: (OC, N, PH, PW) f32.
    """
    if lhs_spec == "NCHW":
        n, c, h, wdim = x.shape
    elif lhs_spec == "CNHW":
        c, n, h, wdim = x.shape
    else:
        raise ValueError(lhs_spec)
    oc, f = w_mat.shape
    kh, kw = ksize
    assert f == c * kh * kw, (f, c, kh, kw)
    oh, ow = h - kh + 1, wdim - kw + 1
    ph, pw = oh // 2, ow // 2
    s = ph * pw
    ns = n * s

    # Extract the 4 pooling phases directly with stride-(2,2) patch ops on
    # offset-sliced inputs.  The "CNHW" output spec puts the F(=C*KH*KW)
    # features first and (N, PH, PW) last, so reshaping to the kernel's
    # (F, N*S) lane-major layout is a free contiguous reshape — no big
    # transpose of the 25x-expanded patches array.  Feature order is
    # (C, KH, KW), identical to PyTorch's weight.reshape(OC, C*KH*KW).
    phases = []
    for a in range(2):
        for b in range(2):
            p = lax.conv_general_dilated_patches(
                x[:, :, a:, b:], (kh, kw), (2, 2), "VALID",
                dimension_numbers=(lhs_spec, "OIHW", "CNHW"),
                precision=lax.Precision.HIGHEST)          # (F, N, PH', PW')
            p = p[:, :, :ph, :pw].reshape(f, ns)
            phases.append(p)
    patches = jnp.stack(phases, axis=0).astype(jnp.bfloat16)   # (4, F, N*S)

    flops = 2 * 4 * oc * f * ns + 4 * oc * ns
    bytes_accessed = (patches.size * patches.dtype.itemsize
                      + w_mat.size * w_mat.dtype.itemsize
                      + b_col.size * b_col.dtype.itemsize
                      + oc * ns * 4)

    # NOTE: grid=(1,) whole-array blocks are right for tiny batches; for
    # training/serving batch sizes, tile N over a "parallel" grid axis so the
    # patch DMA pipelines under the matmuls and v7x can use both TensorCores.
    out = pl.pallas_call(
        _conv_relu_pool_kernel,
        out_shape=jax.ShapeDtypeStruct((oc, ns), jnp.float32),
        grid=(1,),
        in_specs=[
            pl.BlockSpec((4, f, ns), lambda i: (0, 0, 0)),
            pl.BlockSpec((oc, f), lambda i: (0, 0)),
            pl.BlockSpec((oc, 1), lambda i: (0, 0)),
        ],
        out_specs=pl.BlockSpec((oc, ns), lambda i: (0, 0)),
        compiler_params=pltpu.CompilerParams(
            dimension_semantics=("arbitrary",)),
        cost_estimate=pl.CostEstimate(flops=flops, transcendentals=0,
                                      bytes_accessed=bytes_accessed),
    )(patches, w_mat, b_col)
    return out.reshape(oc, n, ph, pw)                     # "CNHW"


def mlp_head(x, w1, b1, w2, b2, w3, b3):
    """relu(x@w1+b1) -> relu(@w2+b2) -> @w3+b3 in a single Pallas kernel."""
    args = (x, w1, b1, w2, b2, w3, b3)
    m = x.shape[0]
    n_out = w3.shape[1]
    flops = 2 * m * (w1.shape[0] * w1.shape[1]
                     + w2.shape[0] * w2.shape[1]
                     + w3.shape[0] * w3.shape[1])
    bytes_accessed = (sum(a.size * a.dtype.itemsize for a in args)
                      + m * n_out * 4)
    return pl.pallas_call(
        _mlp_head_kernel,
        out_shape=jax.ShapeDtypeStruct((m, n_out), jnp.float32),
        grid=(1,),
        in_specs=[pl.BlockSpec(a.shape, lambda i: (0, 0)) for a in args],
        out_specs=pl.BlockSpec((m, n_out), lambda i: (0, 0)),
        compiler_params=pltpu.CompilerParams(
            dimension_semantics=("arbitrary",)),
        cost_estimate=pl.CostEstimate(flops=flops, transcendentals=0,
                                      bytes_accessed=bytes_accessed),
    )(*args)


# ----------------------------------------------------------------------------
# Parameters (PyTorch layouts) + one-time kernel-friendly re-layout
# ----------------------------------------------------------------------------
def init_params(key):
    def uniform(key, shape, fan_in):
        bound = 1.0 / jnp.sqrt(fan_in)
        return jax.random.uniform(key, shape, jnp.float32, -bound, bound)

    ks = jax.random.split(key, 10)
    return {
        "conv1_w": uniform(ks[0], (6, 3, 5, 5), 3 * 5 * 5),
        "conv1_b": uniform(ks[1], (6,), 3 * 5 * 5),
        "conv2_w": uniform(ks[2], (16, 6, 5, 5), 6 * 5 * 5),
        "conv2_b": uniform(ks[3], (16,), 6 * 5 * 5),
        "fc1_w": uniform(ks[4], (120, 16 * 5 * 5), 16 * 5 * 5),
        "fc1_b": uniform(ks[5], (120,), 16 * 5 * 5),
        "fc2_w": uniform(ks[6], (84, 120), 120),
        "fc2_b": uniform(ks[7], (84,), 120),
        "fc3_w": uniform(ks[8], (10, 84), 84),
        "fc3_b": uniform(ks[9], (10,), 84),
    }


def prepare_params(params):
    """One-time re-layout of PyTorch-style params into kernel layouts.

    All transposes / flattens / zero-padding / bf16 casts happen here, never
    in the forward pass.  conv1's output channels are padded 6 -> 8 (full
    sublanes); the matching zero input-channel columns are added to conv2's
    weight so the padding flows through for free.
    """
    c1w = jnp.pad(params["conv1_w"].reshape(6, -1), ((0, 2), (0, 0)))  # (8,75)
    c1b = jnp.pad(params["conv1_b"], (0, 2)).reshape(8, 1)
    c2w = jnp.pad(params["conv2_w"],
                  ((0, 0), (0, 2), (0, 0), (0, 0))).reshape(16, -1)    # (16,200)
    return {
        "conv1_w": c1w.astype(jnp.bfloat16),             # (8, 75)
        "conv1_b": c1b.astype(jnp.float32),              # (8, 1)
        "conv2_w": c2w.astype(jnp.bfloat16),             # (16, 200)
        "conv2_b": params["conv2_b"].reshape(16, 1).astype(jnp.float32),
        "fc1_w": params["fc1_w"].T.astype(jnp.bfloat16),  # (400, 120)
        "fc1_b": params["fc1_b"].reshape(1, -1).astype(jnp.float32),
        "fc2_w": params["fc2_w"].T.astype(jnp.bfloat16),  # (120, 84)
        "fc2_b": params["fc2_b"].reshape(1, -1).astype(jnp.float32),
        "fc3_w": params["fc3_w"].T.astype(jnp.bfloat16),  # (84, 10)
        "fc3_b": params["fc3_b"].reshape(1, -1).astype(jnp.float32),
    }


# ----------------------------------------------------------------------------
# Forward pass
# ----------------------------------------------------------------------------
def neural_net_forward(kparams, x):
    # x: (N, 3, 32, 32) NCHW float32
    a1 = conv_relu_pool(x, kparams["conv1_w"], kparams["conv1_b"], (5, 5),
                        lhs_spec="NCHW")          # (8, N, 14, 14) "CNHW" f32
    a2 = conv_relu_pool(a1, kparams["conv2_w"], kparams["conv2_b"], (5, 5),
                        lhs_spec="CNHW")          # (16, N, 5, 5)  "CNHW" f32
    n = a2.shape[1]
    # torch.flatten(x, 1): (N, 16*5*5) in (C, H, W)-major order.  This is a
    # tiny (N*1600-element) XLA relayout; folding it + the fc stack into the
    # conv2 kernel would save one launch but is not worth the in-kernel
    # layout gymnastics at these sizes.
    x_fc = jnp.transpose(a2, (1, 0, 2, 3)).reshape(n, -1).astype(jnp.bfloat16)
    return mlp_head(x_fc, kparams["fc1_w"], kparams["fc1_b"],
                    kparams["fc2_w"], kparams["fc2_b"],
                    kparams["fc3_w"], kparams["fc3_b"])              # (N, 10)


# Pure-JAX f32 reference for a correctness sanity check.
def reference_forward(params, x):
    hp = lax.Precision.HIGHEST

    def conv(x, w, b):
        y = lax.conv_general_dilated(
            x, w, (1, 1), "VALID",
            dimension_numbers=("NCHW", "OIHW", "NCHW"), precision=hp)
        return jax.nn.relu(y + b[None, :, None, None])

    def pool(x):
        return lax.reduce_window(
            x, -jnp.inf, lax.max, (1, 1, 2, 2), (1, 1, 2, 2), "VALID")

    x = pool(conv(x, params["conv1_w"], params["conv1_b"]))
    x = pool(conv(x, params["conv2_w"], params["conv2_b"]))
    x = x.reshape(x.shape[0], -1)
    x = jax.nn.relu(jnp.dot(x, params["fc1_w"].T, precision=hp) + params["fc1_b"])
    x = jax.nn.relu(jnp.dot(x, params["fc2_w"].T, precision=hp) + params["fc2_b"])
    return jnp.dot(x, params["fc3_w"].T, precision=hp) + params["fc3_b"]


if __name__ == "__main__":
    key = jax.random.PRNGKey(0)
    pkey, xkey = jax.random.split(key)
    params = init_params(pkey)
    kparams = prepare_params(params)
    # Input implied by fc1 = Linear(16*5*5, ...): NCHW (batch=2, 3, 32, 32)
    x = jax.random.normal(xkey, (2, 3, 32, 32), jnp.float32)

    fwd = jax.jit(neural_net_forward)
    out = jax.block_until_ready(fwd(kparams, x))
    ref = jax.block_until_ready(reference_forward(params, x))

    assert out.shape == (2, 10), out.shape
    max_err = float(jnp.max(jnp.abs(out - ref)))
    # bf16 MXU operands (f32 accumulation) => loosen tolerance vs f32 reference.
    assert jnp.allclose(out, ref, atol=1e-2, rtol=1e-2), max_err
    print("KERNEL_OK")
</pallas_src>

<mosaic_0001>
module attributes {stable_mosaic.version = 11 : i64} {
  func.func @_conv_relu_pool_kernel(%arg0: i32, %arg1: memref<4x75x392xbf16, #tpu.memory_space<vmem>>, %arg2: memref<8x75xbf16, #tpu.memory_space<vmem>>, %arg3: memref<8x1xf32, #tpu.memory_space<vmem>>, %arg4: memref<8x392xf32, #tpu.memory_space<vmem>>) attributes {dimension_semantics = [#tpu.dimension_semantics<arbitrary>], iteration_bounds = array<i64: 1>, scalar_prefetch = 0 : i64, scratch_operands = 0 : i64, tpu.core_type = #tpu.core_type<tc>, window_params = [{pipeline_mode = #tpu.pipeline_mode<synchronous>, transform_indices = @transform_0, window_bounds = array<i64: 4, 75, 392>}, {pipeline_mode = #tpu.pipeline_mode<synchronous>, transform_indices = @transform_1, window_bounds = array<i64: 8, 75>}, {pipeline_mode = #tpu.pipeline_mode<synchronous>, transform_indices = @transform_2, window_bounds = array<i64: 8, 1>}, {pipeline_mode = #tpu.pipeline_mode<synchronous>, transform_indices = @transform_3, window_bounds = array<i64: 8, 392>}]} {
    %c0 = arith.constant 0 : index
    %c0_0 = arith.constant 0 : index
    %0 = vector.load %arg2[%c0, %c0_0] : memref<8x75xbf16, #tpu.memory_space<vmem>>, vector<8x75xbf16>
    %c0_1 = arith.constant 0 : index
    %c0_2 = arith.constant 0 : index
    %c0_3 = arith.constant 0 : index
    %1 = vector.load %arg1[%c0_1, %c0_2, %c0_3] : memref<4x75x392xbf16, #tpu.memory_space<vmem>>, vector<1x75x392xbf16>
    %2 = vector.shape_cast %1 : vector<1x75x392xbf16> to vector<75x392xbf16>
    %cst = arith.constant dense<0.000000e+00> : vector<8x392xf32>
    %3 = tpu.matmul %0, %2, %cst {dimension_numbers = #tpu.dot_dimension_numbers<[1], [0], [0], [1], [0, 0, 1, 1], [], []>} : vector<8x75xbf16>, vector<75x392xbf16>, vector<8x392xf32> -> vector<8x392xf32>
    %c1 = arith.constant 1 : index
    %c0_4 = arith.constant 0 : index
    %c0_5 = arith.constant 0 : index
    %4 = vector.load %arg1[%c1, %c0_4, %c0_5] : memref<4x75x392xbf16, #tpu.memory_space<vmem>>, vector<1x75x392xbf16>
    %5 = vector.shape_cast %4 : vector<1x75x392xbf16> to vector<75x392xbf16>
    %cst_6 = arith.constant dense<0.000000e+00> : vector<8x392xf32>
    %6 = tpu.matmul %0, %5, %cst_6 {dimension_numbers = #tpu.dot_dimension_numbers<[1], [0], [0], [1], [0, 0, 1, 1], [], []>} : vector<8x75xbf16>, vector<75x392xbf16>, vector<8x392xf32> -> vector<8x392xf32>
    %7 = arith.maximumf %3, %6 : vector<8x392xf32>
    %c2 = arith.constant 2 : index
    %c0_7 = arith.constant 0 : index
    %c0_8 = arith.constant 0 : index
    %8 = vector.load %arg1[%c2, %c0_7, %c0_8] : memref<4x75x392xbf16, #tpu.memory_space<vmem>>, vector<1x75x392xbf16>
    %9 = vector.shape_cast %8 : vector<1x75x392xbf16> to vector<75x392xbf16>
    %cst_9 = arith.constant dense<0.000000e+00> : vector<8x392xf32>
    %10 = tpu.matmul %0, %9, %cst_9 {dimension_numbers = #tpu.dot_dimension_numbers<[1], [0], [0], [1], [0, 0, 1, 1], [], []>} : vector<8x75xbf16>, vector<75x392xbf16>, vector<8x392xf32> -> vector<8x392xf32>
    %11 = arith.maximumf %7, %10 : vector<8x392xf32>
    %c3 = arith.constant 3 : index
    %c0_10 = arith.constant 0 : index
    %c0_11 = arith.constant 0 : index
    %12 = vector.load %arg1[%c3, %c0_10, %c0_11] : memref<4x75x392xbf16, #tpu.memory_space<vmem>>, vector<1x75x392xbf16>
    %13 = vector.shape_cast %12 : vector<1x75x392xbf16> to vector<75x392xbf16>
    %cst_12 = arith.constant dense<0.000000e+00> : vector<8x392xf32>
    %14 = tpu.matmul %0, %13, %cst_12 {dimension_numbers = #tpu.dot_dimension_numbers<[1], [0], [0], [1], [0, 0, 1, 1], [], []>} : vector<8x75xbf16>, vector<75x392xbf16>, vector<8x392xf32> -> vector<8x392xf32>
    %15 = arith.maximumf %11, %14 : vector<8x392xf32>
    %c0_13 = arith.constant 0 : index
    %c0_14 = arith.constant 0 : index
    %16 = vector.load %arg3[%c0_13, %c0_14] : memref<8x1xf32, #tpu.memory_space<vmem>>, vector<8x1xf32>
    %17 = vector.broadcast %16 : vector<8x1xf32> to vector<8x392xf32>
    %18 = arith.addf %15, %17 : vector<8x392xf32>
    %cst_15 = arith.constant 0.000000e+00 : f32
    %19 = vector.broadcast %cst_15 : f32 to vector<8x392xf32>
    %20 = arith.maximumf %18, %19 : vector<8x392xf32>
    %c0_16 = arith.constant 0 : index
    %c0_17 = arith.constant 0 : index
    %21 = vector.load %arg4[%c0_16, %c0_17] : memref<8x392xf32, #tpu.memory_space<vmem>>, vector<8x392xf32>
    tpu.vector_store %arg4[%c0_16, %c0_17], %20 {strides = array<i32>} : memref<8x392xf32, #tpu.memory_space<vmem>>, vector<8x392xf32>,
    return
  }
  func.func @transform_0(%arg0: i32) -> (i32, i32, i32) {
    %c0_i32 = arith.constant 0 : i32
    %c0_i32_0 = arith.constant 0 : i32
    %c0_i32_1 = arith.constant 0 : i32
    %c0_i32_2 = arith.constant 0 : i32
    return %c0_i32, %c0_i32_0, %c0_i32_1 : i32, i32, i32
  }
  func.func @transform_1(%arg0: i32) -> (i32, i32) {
    %c0_i32 = arith.constant 0 : i32
    %c0_i32_0 = arith.constant 0 : i32
    %c0_i32_1 = arith.constant 0 : i32
    return %c0_i32, %c0_i32_0 : i32, i32
  }
  func.func @transform_2(%arg0: i32) -> (i32, i32) {
    %c0_i32 = arith.constant 0 : i32
    %c0_i32_0 = arith.constant 0 : i32
    %c0_i32_1 = arith.constant 0 : i32
    return %c0_i32, %c0_i32_0 : i32, i32
  }
  func.func @transform_3(%arg0: i32) -> (i32, i32) {
    %c0_i32 = arith.constant 0 : i32
    %c0_i32_0 = arith.constant 0 : i32
    %c0_i32_1 = arith.constant 0 : i32
    return %c0_i32, %c0_i32_0 : i32, i32
  }
}

module attributes {stable_mosaic.version = 11 : i64} {
  func.func @_conv_relu_pool_kernel(%arg0: i32, %arg1: memref<4x200x50xbf16, #tpu.memory_space<vmem>>, %arg2: memref<16x200xbf16, #tpu.memory_space<vmem>>, %arg3: memref<16x1xf32, #tpu.memory_space<vmem>>, %arg4: memref<16x50xf32, #tpu.memory_space<vmem>>) attributes {dimension_semantics = [#tpu.dimension_semantics<arbitrary>], iteration_bounds = array<i64: 1>, scalar_prefetch = 0 : i64, scratch_operands = 0 : i64, tpu.core_type = #tpu.core_type<tc>, window_params = [{pipeline_mode = #tpu.pipeline_mode<synchronous>, transform_indices = @transform_0, window_bounds = array<i64: 4, 200, 50>}, {pipeline_mode = #tpu.pipeline_mode<synchronous>, transform_indices = @transform_1, window_bounds = array<i64: 16, 200>}, {pipeline_mode = #tpu.pipeline_mode<synchronous>, transform_indices = @transform_2, window_bounds = array<i64: 16, 1>}, {pipeline_mode = #tpu.pipeline_mode<synchronous>, transform_indices = @transform_3, window_bounds = array<i64: 16, 50>}]} {
    %c0 = arith.constant 0 : index
    %c0_0 = arith.constant 0 : index
    %0 = vector.load %arg2[%c0, %c0_0] : memref<16x200xbf16, #tpu.memory_space<vmem>>, vector<16x200xbf16>
    %c0_1 = arith.constant 0 : index
    %c0_2 = arith.constant 0 : index
    %c0_3 = arith.constant 0 : index
    %1 = vector.load %arg1[%c0_1, %c0_2, %c0_3] : memref<4x200x50xbf16, #tpu.memory_space<vmem>>, vector<1x200x50xbf16>
    %2 = vector.shape_cast %1 : vector<1x200x50xbf16> to vector<200x50xbf16>
    %cst = arith.constant dense<0.000000e+00> : vector<16x50xf32>
    %3 = tpu.matmul %0, %2, %cst {dimension_numbers = #tpu.dot_dimension_numbers<[1], [0], [0], [1], [0, 0, 1, 1], [], []>} : vector<16x200xbf16>, vector<200x50xbf16>, vector<16x50xf32> -> vector<16x50xf32>
    %c1 = arith.constant 1 : index
    %c0_4 = arith.constant 0 : index
    %c0_5 = arith.constant 0 : index
    %4 = vector.load %arg1[%c1, %c0_4, %c0_5] : memref<4x200x50xbf16, #tpu.memory_space<vmem>>, vector<1x200x50xbf16>
    %5 = vector.shape_cast %4 : vector<1x200x50xbf16> to vector<200x50xbf16>
    %cst_6 = arith.constant dense<0.000000e+00> : vector<16x50xf32>
    %6 = tpu.matmul %0, %5, %cst_6 {dimension_numbers = #tpu.dot_dimension_numbers<[1], [0], [0], [1], [0, 0, 1, 1], [], []>} : vector<16x200xbf16>, vector<200x50xbf16>, vector<16x50xf32> -> vector<16x50xf32>
    %7 = arith.maximumf %3, %6 : vector<16x50xf32>
    %c2 = arith.constant 2 : index
    %c0_7 = arith.constant 0 : index
    %c0_8 = arith.constant 0 : index
    %8 = vector.load %arg1[%c2, %c0_7, %c0_8] : memref<4x200x50xbf16, #tpu.memory_space<vmem>>, vector<1x200x50xbf16>
    %9 = vector.shape_cast %8 : vector<1x200x50xbf16> to vector<200x50xbf16>
    %cst_9 = arith.constant dense<0.000000e+00> : vector<16x50xf32>
    %10 = tpu.matmul %0, %9, %cst_9 {dimension_numbers = #tpu.dot_dimension_numbers<[1], [0], [0], [1], [0, 0, 1, 1], [], []>} : vector<16x200xbf16>, vector<200x50xbf16>, vector<16x50xf32> -> vector<16x50xf32>
    %11 = arith.maximumf %7, %10 : vector<16x50xf32>
    %c3 = arith.constant 3 : index
    %c0_10 = arith.constant 0 : index
    %c0_11 = arith.constant 0 : index
    %12 = vector.load %arg1[%c3, %c0_10, %c0_11] : memref<4x200x50xbf16, #tpu.memory_space<vmem>>, vector<1x200x50xbf16>
    %13 = vector.shape_cast %12 : vector<1x200x50xbf16> to vector<200x50xbf16>
    %cst_12 = arith.constant dense<0.000000e+00> : vector<16x50xf32>
    %14 = tpu.matmul %0, %13, %cst_12 {dimension_numbers = #tpu.dot_dimension_numbers<[1], [0], [0], [1], [0, 0, 1, 1], [], []>} : vector<16x200xbf16>, vector<200x50xbf16>, vector<16x50xf32> -> vector<16x50xf32>
    %15 = arith.maximumf %11, %14 : vector<16x50xf32>
    %c0_13 = arith.constant 0 : index
    %c0_14 = arith.constant 0 : index
    %16 = vector.load %arg3[%c0_13, %c0_14] : memref<16x1xf32, #tpu.memory_space<vmem>>, vector<16x1xf32>
    %17 = vector.broadcast %16 : vector<16x1xf32> to vector<16x50xf32>
    %18 = arith.addf %15, %17 : vector<16x50xf32>
    %cst_15 = arith.constant 0.000000e+00 : f32
    %19 = vector.broadcast %cst_15 : f32 to vector<16x50xf32>
    %20 = arith.maximumf %18, %19 : vector<16x50xf32>
    %c0_16 = arith.constant 0 : index
    %c0_17 = arith.constant 0 : index
    %21 = vector.load %arg4[%c0_16, %c0_17] : memref<16x50xf32, #tpu.memory_space<vmem>>, vector<16x50xf32>
    tpu.vector_store %arg4[%c0_16, %c0_17], %20 {strides = array<i32>} : memref<16x50xf32, #tpu.memory_space<vmem>>, vector<16x50xf32>,
    return
  }
  func.func @transform_0(%arg0: i32) -> (i32, i32, i32) {
    %c0_i32 = arith.constant 0 : i32
    %c0_i32_0 = arith.constant 0 : i32
    %c0_i32_1 = arith.constant 0 : i32
    %c0_i32_2 = arith.constant 0 : i32
    return %c0_i32, %c0_i32_0, %c0_i32_1 : i32, i32, i32
  }
  func.func @transform_1(%arg0: i32) -> (i32, i32) {
    %c0_i32 = arith.constant 0 : i32
    %c0_i32_0 = arith.constant 0 : i32
    %c0_i32_1 = arith.constant 0 : i32
    return %c0_i32, %c0_i32_0 : i32, i32
  }
  func.func @transform_2(%arg0: i32) -> (i32, i32) {
    %c0_i32 = arith.constant 0 : i32
    %c0_i32_0 = arith.constant 0 : i32
    %c0_i32_1 = arith.constant 0 : i32
    return %c0_i32, %c0_i32_0 : i32, i32
  }
  func.func @transform_3(%arg0: i32) -> (i32, i32) {
    %c0_i32 = arith.constant 0 : i32
    %c0_i32_0 = arith.constant 0 : i32
    %c0_i32_1 = arith.constant 0 : i32
    return %c0_i32, %c0_i32_0 : i32, i32
  }
}

module attributes {stable_mosaic.version = 11 : i64} {
  func.func @_mlp_head_kernel(%arg0: i32, %arg1: memref<2x400xbf16, #tpu.memory_space<vmem>>, %arg2: memref<400x120xbf16, #tpu.memory_space<vmem>>, %arg3: memref<1x120xf32, #tpu.memory_space<vmem>>, %arg4: memref<120x84xbf16, #tpu.memory_space<vmem>>, %arg5: memref<1x84xf32, #tpu.memory_space<vmem>>, %arg6: memref<84x10xbf16, #tpu.memory_space<vmem>>, %arg7: memref<1x10xf32, #tpu.memory_space<vmem>>, %arg8: memref<2x10xf32, #tpu.memory_space<vmem>>) attributes {dimension_semantics = [#tpu.dimension_semantics<arbitrary>], iteration_bounds = array<i64: 1>, scalar_prefetch = 0 : i64, scratch_operands = 0 : i64, tpu.core_type = #tpu.core_type<tc>, window_params = [{pipeline_mode = #tpu.pipeline_mode<synchronous>, transform_indices = @transform_0, window_bounds = array<i64: 2, 400>}, {pipeline_mode = #tpu.pipeline_mode<synchronous>, transform_indices = @transform_1, window_bounds = array<i64: 400, 120>}, {pipeline_mode = #tpu.pipeline_mode<synchronous>, transform_indices = @transform_2, window_bounds = array<i64: 1, 120>}, {pipeline_mode = #tpu.pipeline_mode<synchronous>, transform_indices = @transform_3, window_bounds = array<i64: 120, 84>}, {pipeline_mode = #tpu.pipeline_mode<synchronous>, transform_indices = @transform_4, window_bounds = array<i64: 1, 84>}, {pipeline_mode = #tpu.pipeline_mode<synchronous>, transform_indices = @transform_5, window_bounds = array<i64: 84, 10>}, {pipeline_mode = #tpu.pipeline_mode<synchronous>, transform_indices = @transform_6, window_bounds = array<i64: 1, 10>}, {pipeline_mode = #tpu.pipeline_mode<synchronous>, transform_indices = @transform_7, window_bounds = array<i64: 2, 10>}]} {
    %c0 = arith.constant 0 : index
    %c0_0 = arith.constant 0 : index
    %0 = vector.load %arg1[%c0, %c0_0] : memref<2x400xbf16, #tpu.memory_space<vmem>>, vector<2x400xbf16>
    %c0_1 = arith.constant 0 : index
    %c0_2 = arith.constant 0 : index
    %1 = vector.load %arg2[%c0_1, %c0_2] : memref<400x120xbf16, #tpu.memory_space<vmem>>, vector<400x120xbf16>
    %cst = arith.constant dense<0.000000e+00> : vector<2x120xf32>
    %2 = tpu.matmul %0, %1, %cst {dimension_numbers = #tpu.dot_dimension_numbers<[1], [0], [0], [1], [0, 0, 1, 1], [], []>} : vector<2x400xbf16>, vector<400x120xbf16>, vector<2x120xf32> -> vector<2x120xf32>
    %c0_3 = arith.constant 0 : index
    %c0_4 = arith.constant 0 : index
    %3 = vector.load %arg3[%c0_3, %c0_4] : memref<1x120xf32, #tpu.memory_space<vmem>>, vector<1x120xf32>
    %4 = vector.broadcast %3 : vector<1x120xf32> to vector<2x120xf32>
    %5 = arith.addf %2, %4 : vector<2x120xf32>
    %cst_5 = arith.constant 0.000000e+00 : f32
    %6 = vector.broadcast %cst_5 : f32 to vector<2x120xf32>
    %7 = arith.maximumf %5, %6 : vector<2x120xf32>
    %8 = arith.truncf %7 : vector<2x120xf32> to vector<2x120xbf16>
    %c0_6 = arith.constant 0 : index
    %c0_7 = arith.constant 0 : index
    %9 = vector.load %arg4[%c0_6, %c0_7] : memref<120x84xbf16, #tpu.memory_space<vmem>>, vector<120x84xbf16>
    %cst_8 = arith.constant dense<0.000000e+00> : vector<2x84xf32>
    %10 = tpu.matmul %8, %9, %cst_8 {dimension_numbers = #tpu.dot_dimension_numbers<[1], [0], [0], [1], [0, 0, 1, 1], [], []>} : vector<2x120xbf16>, vector<120x84xbf16>, vector<2x84xf32> -> vector<2x84xf32>
    %c0_9 = arith.constant 0 : index
    %c0_10 = arith.constant 0 : index
    %11 = vector.load %arg5[%c0_9, %c0_10] : memref<1x84xf32, #tpu.memory_space<vmem>>, vector<1x84xf32>
    %12 = vector.broadcast %11 : vector<1x84xf32> to vector<2x84xf32>
    %13 = arith.addf %10, %12 : vector<2x84xf32>
    %cst_11 = arith.constant 0.000000e+00 : f32
    %14 = vector.broadcast %cst_11 : f32 to vector<2x84xf32>
    %15 = arith.maximumf %13, %14 : vector<2x84xf32>
    %16 = arith.truncf %15 : vector<2x84xf32> to vector<2x84xbf16>
    %c0_12 = arith.constant 0 : index
    %c0_13 = arith.constant 0 : index
    %17 = vector.load %arg6[%c0_12, %c0_13] : memref<84x10xbf16, #tpu.memory_space<vmem>>, vector<84x10xbf16>
    %cst_14 = arith.constant dense<0.000000e+00> : vector<2x10xf32>
    %18 = tpu.matmul %16, %17, %cst_14 {dimension_numbers = #tpu.dot_dimension_numbers<[1], [0], [0], [1], [0, 0, 1, 1], [], []>} : vector<2x84xbf16>, vector<84x10xbf16>, vector<2x10xf32> -> vector<2x10xf32>
    %c0_15 = arith.constant 0 : index
    %c0_16 = arith.constant 0 : index
    %19 = vector.load %arg7[%c0_15, %c0_16] : memref<1x10xf32, #tpu.memory_space<vmem>>, vector<1x10xf32>
    %20 = vector.broadcast %19 : vector<1x10xf32> to vector<2x10xf32>
    %21 = arith.addf %18, %20 : vector<2x10xf32>
    %c0_17 = arith.constant 0 : index
    %c0_18 = arith.constant 0 : index
    %22 = vector.load %arg8[%c0_17, %c0_18] : memref<2x10xf32, #tpu.memory_space<vmem>>, vector<2x10xf32>
    tpu.vector_store %arg8[%c0_17, %c0_18], %21 {strides = array<i32>} : memref<2x10xf32, #tpu.memory_space<vmem>>, vector<2x10xf32>,
    return
  }
  func.func @transform_0(%arg0: i32) -> (i32, i32) {
    %c0_i32 = arith.constant 0 : i32
    %c0_i32_0 = arith.constant 0 : i32
    %c0_i32_1 = arith.constant 0 : i32
    return %c0_i32, %c0_i32_0 : i32, i32
  }
  func.func @transform_1(%arg0: i32) -> (i32, i32) {
    %c0_i32 = arith.constant 0 : i32
    %c0_i32_0 = arith.constant 0 : i32
    %c0_i32_1 = arith.constant 0 : i32
    return %c0_i32, %c0_i32_0 : i32, i32
  }
  func.func @transform_2(%arg0: i32) -> (i32, i32) {
    %c0_i32 = arith.constant 0 : i32
    %c0_i32_0 = arith.constant 0 : i32
    %c0_i32_1 = arith.constant 0 : i32
    return %c0_i32, %c0_i32_0 : i32, i32
  }
  func.func @transform_3(%arg0: i32) -> (i32, i32) {
    %c0_i32 = arith.constant 0 : i32
    %c0_i32_0 = arith.constant 0 : i32
    %c0_i32_1 = arith.constant 0 : i32
    return %c0_i32, %c0_i32_0 : i32, i32
  }
  func.func @transform_4(%arg0: i32) -> (i32, i32) {
    %c0_i32 = arith.constant 0 : i32
    %c0_i32_0 = arith.constant 0 : i32
    %c0_i32_1 = arith.constant 0 : i32
    return %c0_i32, %c0_i32_0 : i32, i32
  }
  func.func @transform_5(%arg0: i32) -> (i32, i32) {
    %c0_i32 = arith.constant 0 : i32
    %c0_i32_0 = arith.constant 0 : i32
    %c0_i32_1 = arith.constant 0 : i32
    return %c0_i32, %c0_i32_0 : i32, i32
  }
  func.func @transform_6(%arg0: i32) -> (i32, i32) {
    %c0_i32 = arith.constant 0 : i32
    %c0_i32_0 = arith.constant 0 : i32
    %c0_i32_1 = arith.constant 0 : i32
    return %c0_i32, %c0_i32_0 : i32, i32
  }
  func.func @transform_7(%arg0: i32) -> (i32, i32) {
    %c0_i32 = arith.constant 0 : i32
    %c0_i32_0 = arith.constant 0 : i32
    %c0_i32_1 = arith.constant 0 : i32
    return %c0_i32, %c0_i32_0 : i32, i32
  }
}

</mosaic_0001>

<bundles_post_ra>
// kernel: neural_net_forward.3
= control target key start
LH: loop header
LB: loop body
LE: loop exit
PB: predicated region body
PF: predicated region fallthrough
CT: control target
= control target key end

     0   :  { %v1173_v1 = vmov 0   ;;  %vm136_vm0 = vcmask 1044480   ;;  %vm137_vm1 = vcmask 1045504   ;;  %v1174_v10 = vmov 65535   ;;  %s1498_s0 = inlined_call_operand.vmem [shape: bf16[4,75,392], index: 0, kind: input, shape index: {}]   ;;  %s1499_s1 = inlined_call_operand.vmem [shape: bf16[8,75], index: 1, kind: input, shape index: {}]   ;;  %s1500_s2 = inlined_call_operand.vmem [shape: f32[8,1], index: 2, kind: input, shape index: {}]   ;;  %s1501_s3 = inlined_call_operand.vmem [shape: f32[8,392], index: 3, kind: output, shape index: {}]  }
   0x1   :  { %v1053_v0 = vld [vmem:[%s1498_s0 + $0x4] ss:$16 sps:$4 sm:$0xff]   ;;  %184 = vmatprep.mubr.bf16.mxu0 %v1173_v1  ;;  %225 = vmatprep.mubr.bf16.mxu1 %v1173_v1  ;;  %v1055_v2 = vld [vmem:[%s1498_s0 + $0xc] ss:$16 sps:$4 sm:$0xff]   ;;  %v1057_v3 = vld [vmem:[%s1498_s0] ss:$16 sps:$4 sm:$0xff]  }
   0x2   :  { %1052 = vset.pattern.permute.xlu0 %v1173_v1  ;;  %152 = vmatprep.subr.bf16.mxu0 %v1053_v0  ;;  %v1058_v4 = vld [vmem:[%s1498_s0 + $0x8] ss:$16 sps:$4 sm:$0xff]   ;;  %v1059_v5 = vld [vmem:[%s1498_s0 + $0x24] ss:$16 sps:$4 sm:$0xff]   ;;  %v1061_v6 = vld [vmem:[%s1498_s0 + $0x2c] ss:$16 sps:$4 sm:$0xff]  }
   0x3   :  { %193 = vmatprep.subr.bf16.mxu1 %v1055_v2  ;;  %153 = vmatpush1.bf16.msra.mxu0 %v1057_v3  ;;  %v1063_v7 = vld [vmem:[%s1498_s0 + $0x20] ss:$16 sps:$4 sm:$0xff]   ;;  %v1064_v8 = vld [vmem:[%s1498_s0 + $0x28] ss:$16 sps:$4 sm:$0xff]   ;;  %v1065_v9 = vld [vmem:[%s1498_s0 + $0x44] ss:$16 sps:$4 sm:$0xff]  }
   0x4   :  { %194 = vmatpush1.bf16.msra.mxu1 %v1058_v4  ;;  %154 = vmatprep.subr.bf16.mxu0 %v1059_v5  ;;  %v138_v11 = vsel %vm136_vm0, 4294967295, %v1174_v10  ;;  %v1067_v12 = vld [vmem:[%s1498_s0 + $0x4c] ss:$16 sps:$4 sm:$0xff]   ;;  %v1069_v13 = vld [vmem:[%s1498_s0 + $0x40] ss:$16 sps:$4 sm:$0xff]   ;;  %vm132_vm2 = vcmask 613376  }
   0x5   :  { %195 = vmatprep.subr.bf16.mxu1 %v1061_v6  ;;  %v1070_v14 = vld [vmem:[%s1498_s0 + $0x48] ss:$16 sps:$4 sm:$0xff]   ;;  %v1071_v15 = vld [vmem:[%s1498_s0 + $0x64] ss:$16 sps:$4 sm:$0xff]   ;;  %v1073_v16 = vld [vmem:[%s1498_s0 + $0x6c] ss:$16 sps:$4 sm:$0xff]  }
   0x6   :  { %v1075_v17 = vld [vmem:[%s1498_s0 + $0x60] ss:$16 sps:$4 sm:$0xff]   ;;  %v1076_v18 = vld [vmem:[%s1498_s0 + $0x68] ss:$16 sps:$4 sm:$0xff]   ;;  %v1246_v19 = vsel %vm137_vm1, %v138_v11, 0  ;;  %vm896_vm3 = vcmask 64512  }
   0x7   :  { %155 = vmatpush1.bf16.msra.mxu0 %v1063_v7  ;;  %v1077_v20 = vld [vmem:[%s1498_s0 + $0x84] ss:$16 sps:$4 sm:$0x3f]   ;;  %v1079_v21 = vld [vmem:[%s1498_s0 + $0x8c] ss:$16 sps:$4 sm:$0x3f]  }
   0x8   :  { %196 = vmatpush1.bf16.msra.mxu1 %v1064_v8  ;;  %156 = vmatprep.subr.bf16.mxu0 %v1065_v9  ;;  %v144_v22 = vand.u32 %v1077_v20, %v1246_v19  ;;  %v1081_v23 = vld [vmem:[%s1498_s0 + $0x80] ss:$16 sps:$4 sm:$0x3f]   ;;  %v1082_v24 = vld [vmem:[%s1498_s0 + $0x88] ss:$16 sps:$4 sm:$0x3f]   ;;  %v150_v25 = vand.u32 %v1079_v21, %v1246_v19 }
   0x9   :  { %197 = vmatprep.subr.bf16.mxu1 %v1067_v12  ;;  %v141_v26 = vand.u32 %v1081_v23, %v1246_v19  ;;  %v147_v27 = vand.u32 %v1082_v24, %v1246_v19  ;;  %v1085_v28 = vld [vmem:[%s1498_s0 + $0xa4] ss:$16 sps:$4 sm:$0xff]   ;;  %v1088_v29 = vld [vmem:[%s1498_s0 + $0xac] ss:$16 sps:$4 sm:$0xff]   ;;  %v1273_v30 = vld [vmem:[%s1499_s1] sm:$0xf] }
   0xa   :  { %v1083_v31 = vld [vmem:[%s1498_s0 + $0xa0] ss:$16 sps:$4 sm:$0xff]   ;;  %v1086_v32 = vld [vmem:[%s1498_s0 + $0xa8] ss:$16 sps:$4 sm:$0xff]   ;;  %v1091_v33 = vld [vmem:[%s1498_s0 + $0xc4] ss:$16 sps:$4 sm:$0xff]  }
   0xb   :  { %157 = vmatpush1.bf16.msra.mxu0 %v1069_v13  ;;  %v1094_v34 = vld [vmem:[%s1498_s0 + $0xcc] ss:$16 sps:$4 sm:$0xff]   ;;  %v1089_v35 = vld [vmem:[%s1498_s0 + $0xc0] ss:$16 sps:$4 sm:$0xff]   ;;  %v1092_v36 = vld [vmem:[%s1498_s0 + $0xc8] ss:$16 sps:$4 sm:$0xff]  }
   0xc   :  { %198 = vmatpush1.bf16.msra.mxu1 %v1070_v14  ;;  %158 = vmatprep.subr.bf16.mxu0 %v1071_v15  ;;  %v1097_v37 = vld [vmem:[%s1498_s0 + $0xe4] ss:$16 sps:$4 sm:$0xff]   ;;  %v1100_v38 = vld [vmem:[%s1498_s0 + $0xec] ss:$16 sps:$4 sm:$0xff]   ;;  %v1095_v39 = vld [vmem:[%s1498_s0 + $0xe0] ss:$16 sps:$4 sm:$0xff]  }
   0xd   :  { %199 = vmatprep.subr.bf16.mxu1 %v1073_v16  ;;  %v1098_v40 = vld [vmem:[%s1498_s0 + $0xe8] ss:$16 sps:$4 sm:$0xff]   ;;  %v1103_v41 = vld [vmem:[%s1498_s0 + $0x104] ss:$16 sps:$4 sm:$0xff]   ;;  %v1106_v42 = vld [vmem:[%s1498_s0 + $0x10c] ss:$16 sps:$4 sm:$0xff]  }
   0xe   :  { %v1109_v43 = vld [vmem:[%s1498_s0 + $0x124] ss:$16 sps:$4 sm:$0x3f]   ;;  %v1112_v44 = vld [vmem:[%s1498_s0 + $0x12c] ss:$16 sps:$4 sm:$0x3f]  }
   0xf   :  { %159 = vmatpush1.bf16.msra.mxu0 %v1075_v17  ;;  %v1101_v45 = vld [vmem:[%s1498_s0 + $0x100] ss:$16 sps:$4 sm:$0xff]   ;;  %v1104_v47 = vld [vmem:[%s1498_s0 + $0x108] ss:$16 sps:$4 sm:$0xff]   ;;  %v355_v49 = vand.u32 %v1109_v43, %v1246_v19  ;;  %v361_v50 = vand.u32 %v1112_v44, %v1246_v19  ;;  %v1115_v53 = vld [vmem:[%s1498_s0 + $0x144] ss:$16 sps:$4 sm:$0xff]  }
  0x10   :  { %200 = vmatpush1.bf16.msra.mxu1 %v1076_v18  ;;  %160 = vmatprep.subr.bf16.mxu0 %v144_v22  ;;  %v1107_v46 = vld [vmem:[%s1498_s0 + $0x120] ss:$16 sps:$4 sm:$0x3f]   ;;  %v1110_v48 = vld [vmem:[%s1498_s0 + $0x128] ss:$16 sps:$4 sm:$0x3f]  }
  0x11   :  { %201 = vmatprep.subr.bf16.mxu1 %v150_v25  ;;  %v352_v51 = vand.u32 %v1107_v46, %v1246_v19  ;;  %v358_v52 = vand.u32 %v1110_v48, %v1246_v19  ;;  %v1118_v54 = vld [vmem:[%s1498_s0 + $0x14c] ss:$16 sps:$4 sm:$0xff]   ;;  %v1113_v55 = vld [vmem:[%s1498_s0 + $0x140] ss:$16 sps:$4 sm:$0xff]   ;;  %v1116_v56 = vld [vmem:[%s1498_s0 + $0x148] ss:$16 sps:$4 sm:$0xff]  }
  0x12   :  { %v1121_v57 = vld [vmem:[%s1498_s0 + $0x164] ss:$16 sps:$4 sm:$0xff]   ;;  %v1124_v58 = vld [vmem:[%s1498_s0 + $0x16c] ss:$16 sps:$4 sm:$0xff]   ;;  %v1119_v59 = vld [vmem:[%s1498_s0 + $0x160] ss:$16 sps:$4 sm:$0xff]  }
  0x13   :  { %161 = vmatpush1.bf16.msra.mxu0 %v141_v26  ;;  %v1122_v60 = vld [vmem:[%s1498_s0 + $0x168] ss:$16 sps:$4 sm:$0xff]   ;;  %v1127_v61 = vld [vmem:[%s1498_s0 + $0x184] ss:$16 sps:$4 sm:$0xff]   ;;  %v1130_v62 = vld [vmem:[%s1498_s0 + $0x18c] ss:$16 sps:$4 sm:$0xff]  }
  0x14   :  { %202 = vmatpush1.bf16.msra.mxu1 %v147_v27  ;;  %363 = vmatprep.subr.bf16.mxu0 %v1085_v28  ;;  %v1125_v63 = vld [vmem:[%s1498_s0 + $0x180] ss:$16 sps:$4 sm:$0xff]   ;;  %v1128_v0 = vld [vmem:[%s1498_s0 + $0x188] ss:$16 sps:$4 sm:$0xff]   ;;  %v1133_v2 = vld [vmem:[%s1498_s0 + $0x1a4] ss:$16 sps:$4 sm:$0xff]  }
  0x15   :  { %404 = vmatprep.subr.bf16.mxu1 %v1088_v29  ;;  %v1136_v3 = vld [vmem:[%s1498_s0 + $0x1ac] ss:$16 sps:$4 sm:$0xff]   ;;  %v1139_v4 = vld [vmem:[%s1498_s0 + $0x1c4] ss:$16 sps:$4 sm:$0x3f]  }
  0x16   :  { %922 = vmatmul.mubr.msk.bf16.vlgmr.msra.gmra.mrb[0].mxu0 %vm132_vm2, %v1273_v30  ;;  %v1142_v5 = vld [vmem:[%s1498_s0 + $0x1cc] ss:$16 sps:$4 sm:$0x3f]   ;;  %v1131_v6 = vld [vmem:[%s1498_s0 + $0x1a0] ss:$16 sps:$4 sm:$0xff]   ;;  %v570_v10 = vand.u32 %v1139_v4, %v1246_v19 }
  0x17   :  { %923 = vmatmul.mubr.msk.bf16.vlgmr.msra.gmra.mrb[0].mxu1 %vm132_vm2, %v1273_v30  ;;  %364 = vmatpush1.bf16.msra.mxu0 %v1083_v31  ;;  %v1134_v7 = vld [vmem:[%s1498_s0 + $0x1a8] ss:$16 sps:$4 sm:$0xff]   ;;  %v1137_v8 = vld [vmem:[%s1498_s0 + $0x1c0] ss:$16 sps:$4 sm:$0x3f]   ;;  %v576_v11 = vand.u32 %v1142_v5, %v1246_v19 }
  0x18   :  { %405 = vmatpush1.bf16.msra.mxu1 %v1086_v32  ;;  %365 = vmatprep.subr.bf16.mxu0 %v1091_v33  ;;  %v1140_v9 = vld [vmem:[%s1498_s0 + $0x1c8] ss:$16 sps:$4 sm:$0x3f]   ;;  %v879_v12 = vld [vmem:[%s1500_s2] sm:$0xff]  ;;  %v567_v13 = vand.u32 %v1137_v8, %v1246_v19  ;;  %v1148_v16 = vld [vmem:[%s1498_s0 + $0x1ec] ss:$16 sps:$4 sm:$0xff]  }
  0x19   :  { %406 = vmatprep.subr.bf16.mxu1 %v1094_v34  ;;  %395 = vmatprep.mubr.bf16.mxu0 %v1173_v1  ;;  %v573_v14 = vand.u32 %v1140_v9, %v1246_v19  ;;  %v1145_v15 = vld [vmem:[%s1498_s0 + $0x1e4] ss:$16 sps:$4 sm:$0xff]   ;;  %v1143_v17 = vld [vmem:[%s1498_s0 + $0x1e0] ss:$16 sps:$4 sm:$0xff]   ;;  %v1146_v18 = vld [vmem:[%s1498_s0 + $0x1e8] ss:$16 sps:$4 sm:$0xff]  }
  0x1a   :  { %436 = vmatprep.mubr.bf16.mxu1 %v1173_v1  ;;  %882 = vperm.xlu0 %1052, %v879_v12   ;;  %v1151_v20 = vld [vmem:[%s1498_s0 + $0x204] ss:$16 sps:$4 sm:$0xff]   ;;  %v1154_v21 = vld [vmem:[%s1498_s0 + $0x20c] ss:$16 sps:$4 sm:$0xff]   ;;  %v1149_v22 = vld [vmem:[%s1498_s0 + $0x200] ss:$16 sps:$4 sm:$0xff]  }
  0x1b   :  { %366 = vmatpush1.bf16.msra.mxu0 %v1089_v35  ;;  %v1152_v23 = vld [vmem:[%s1498_s0 + $0x208] ss:$16 sps:$4 sm:$0xff]   ;;  %v1157_v24 = vld [vmem:[%s1498_s0 + $0x224] ss:$16 sps:$4 sm:$0xff]   ;;  %v1160_v25 = vld [vmem:[%s1498_s0 + $0x22c] ss:$16 sps:$4 sm:$0xff]  }
  0x1c   :  { %407 = vmatpush1.bf16.msra.mxu1 %v1092_v36  ;;  %367 = vmatprep.subr.bf16.mxu0 %v1097_v37  ;;  %v1155_v26 = vld [vmem:[%s1498_s0 + $0x220] ss:$16 sps:$4 sm:$0xff]   ;;  %v1158_v27 = vld [vmem:[%s1498_s0 + $0x228] ss:$16 sps:$4 sm:$0xff]   ;;  %v1163_v28 = vld [vmem:[%s1498_s0 + $0x244] ss:$16 sps:$4 sm:$0xff]  }
  0x1d   :  { %408 = vmatprep.subr.bf16.mxu1 %v1100_v38  ;;  %v1166_v29 = vld [vmem:[%s1498_s0 + $0x24c] ss:$16 sps:$4 sm:$0xff]   ;;  %v1161_v32 = vld [vmem:[%s1498_s0 + $0x240] ss:$16 sps:$4 sm:$0xff]   ;;  %v1164_v33 = vld [vmem:[%s1498_s0 + $0x248] ss:$16 sps:$4 sm:$0xff]  }
  0x1e   :  { %v1172_v31 = vld [vmem:[%s1498_s0 + $0x26c] ss:$16 sps:$4 sm:$0x3f]   ;;  %v1167_v34 = vld [vmem:[%s1498_s0 + $0x260] ss:$16 sps:$4 sm:$0x3f]  }
  0x1f   :  { %368 = vmatpush1.bf16.msra.mxu0 %v1095_v39  ;;  %v1170_v35 = vld [vmem:[%s1498_s0 + $0x268] ss:$16 sps:$4 sm:$0x3f]   ;;  %v791_v37 = vand.u32 %v1172_v31, %v1246_v19  ;;  %v782_v38 = vand.u32 %v1167_v34, %v1246_v19 }
  0x20   :  { %409 = vmatpush1.bf16.msra.mxu1 %v1098_v40  ;;  %369 = vmatprep.subr.bf16.mxu0 %v1103_v41  ;;  %v788_v39 = vand.u32 %v1170_v35, %v1246_v19 }
  0x21   :  { %410 = vmatprep.subr.bf16.mxu1 %v1106_v42 }
  0x23   :  { %370 = vmatpush1.bf16.msra.mxu0 %v1101_v45 }
  0x24   :  { %411 = vmatpush1.bf16.msra.mxu1 %v1104_v47  ;;  %371 = vmatprep.subr.bf16.mxu0 %v355_v49 }
  0x25   :  { %412 = vmatprep.subr.bf16.mxu1 %v361_v50 }
  0x27   :  { %372 = vmatpush1.bf16.msra.mxu0 %v352_v51 }
  0x28   :  { %413 = vmatpush1.bf16.msra.mxu1 %v358_v52  ;;  %578 = vmatprep.subr.bf16.mxu0 %v1115_v53 }
  0x29   :  { %619 = vmatprep.subr.bf16.mxu1 %v1118_v54 }
  0x2a   :  { %964 = vmatmul.mubr.msk.bf16.vlgmr.msra.gmra.mrb[4].mxu0 %vm132_vm2, %v1273_v30 }
  0x2b   :  { %965 = vmatmul.mubr.msk.bf16.vlgmr.msra.gmra.mrb[4].mxu1 %vm132_vm2, %v1273_v30  ;;  %579 = vmatpush1.bf16.msra.mxu0 %v1113_v55 }
  0x2c   :  { %620 = vmatpush1.bf16.msra.mxu1 %v1116_v56  ;;  %580 = vmatprep.subr.bf16.mxu0 %v1121_v57 }
  0x2d   :  { %621 = vmatprep.subr.bf16.mxu1 %v1124_v58  ;;  %610 = vmatprep.mubr.bf16.mxu0 %v1173_v1 }
  0x2e   :  { %651 = vmatprep.mubr.bf16.mxu1 %v1173_v1 }
  0x2f   :  { %581 = vmatpush1.bf16.msra.mxu0 %v1119_v59 }
  0x30   :  { %622 = vmatpush1.bf16.msra.mxu1 %v1122_v60  ;;  %582 = vmatprep.subr.bf16.mxu0 %v1127_v61 }
  0x31   :  { %623 = vmatprep.subr.bf16.mxu1 %v1130_v62 }
  0x33   :  { %583 = vmatpush1.bf16.msra.mxu0 %v1125_v63 }
  0x34   :  { %624 = vmatpush1.bf16.msra.mxu1 %v1128_v0  ;;  %584 = vmatprep.subr.bf16.mxu0 %v1133_v2 }
  0x35   :  { %625 = vmatprep.subr.bf16.mxu1 %v1136_v3 }
  0x37   :  { %585 = vmatpush1.bf16.msra.mxu0 %v1131_v6 }
  0x38   :  { %626 = vmatpush1.bf16.msra.mxu1 %v1134_v7  ;;  %586 = vmatprep.subr.bf16.mxu0 %v570_v10 }
  0x39   :  { %627 = vmatprep.subr.bf16.mxu1 %v576_v11 }
  0x3b   :  { %587 = vmatpush1.bf16.msra.mxu0 %v567_v13 }
  0x3c   :  { %628 = vmatpush1.bf16.msra.mxu1 %v573_v14  ;;  %793 = vmatprep.subr.bf16.mxu0 %v1145_v15 }
  0x3d   :  { %834 = vmatprep.subr.bf16.mxu1 %v1148_v16 }
  0x3e   :  { %1006 = vmatmul.mubr.msk.bf16.vlgmr.msra.gmra.mrb[8].mxu0 %vm132_vm2, %v1273_v30 }
  0x3f   :  { %1007 = vmatmul.mubr.msk.bf16.vlgmr.msra.gmra.mrb[8].mxu1 %vm132_vm2, %v1273_v30  ;;  %794 = vmatpush1.bf16.msra.mxu0 %v1143_v17 }
  0x40   :  { %835 = vmatpush1.bf16.msra.mxu1 %v1146_v18  ;;  %795 = vmatprep.subr.bf16.mxu0 %v1151_v20 }
  0x41   :  { %836 = vmatprep.subr.bf16.mxu1 %v1154_v21  ;;  %825 = vmatprep.mubr.bf16.mxu0 %v1173_v1 }
  0x42   :  { %866 = vmatprep.mubr.bf16.mxu1 %v1173_v1  ;;  %v1169_v1 = vld [vmem:[%s1498_s0 + $0x264] ss:$16 sps:$4 sm:$0x3f]  }
  0x43   :  { %796 = vmatpush1.bf16.msra.mxu0 %v1149_v22  ;;  %v785_v36 = vand.u32 %v1169_v1, %v1246_v19 }
  0x44   :  { %837 = vmatpush1.bf16.msra.mxu1 %v1152_v23  ;;  %797 = vmatprep.subr.bf16.mxu0 %v1157_v24 }
  0x45   :  { %838 = vmatprep.subr.bf16.mxu1 %v1160_v25 }
  0x47   :  { %798 = vmatpush1.bf16.msra.mxu0 %v1155_v26 }
  0x48   :  { %839 = vmatpush1.bf16.msra.mxu1 %v1158_v27  ;;  %799 = vmatprep.subr.bf16.mxu0 %v1163_v28 }
  0x49   :  { %840 = vmatprep.subr.bf16.mxu1 %v1166_v29 }
  0x4b   :  { %800 = vmatpush1.bf16.msra.mxu0 %v1161_v32 }
  0x4c   :  { %841 = vmatpush1.bf16.msra.mxu1 %v1164_v33  ;;  %801 = vmatprep.subr.bf16.mxu0 %v785_v36 }
  0x4d   :  { %842 = vmatprep.subr.bf16.mxu1 %v791_v37 }
  0x4f   :  { %802 = vmatpush1.bf16.msra.mxu0 %v782_v38 }
  0x50   :  { %843 = vmatpush1.bf16.msra.mxu1 %v788_v39 }
  0x52   :  { %1048 = vmatmul.mubr.msk.bf16.vlgmr.msra.gmra.mrb[12].mxu0 %vm132_vm2, %v1273_v30 }
  0x53   :  { %1049 = vmatmul.mubr.msk.bf16.vlgmr.msra.gmra.mrb[12].mxu1 %vm132_vm2, %v1273_v30 }
  0x99   :  { %v883_v7 = vpop.permute.xlu0 %882 }
  0xe9   :  { %v186_v40 = vpop.f32.mrb[0].mxu0 }
  0xea   :  { %v227_v41 = vpop.f32.mrb[0].mxu1  ;;  %v188_v42 = vpop.f32.mrb[1].mxu0 }
  0xeb   :  { %v229_v43 = vpop.f32.mrb[1].mxu1  ;;  %v190_v44 = vpop.f32.mrb[2].mxu0 }
  0xec   :  { %v231_v45 = vpop.f32.mrb[2].mxu1  ;;  %v191_v46 = vpop.f32.mrb[3].mxu0 }
  0xed   :  { %v232_v47 = vpop.f32.mrb[3].mxu1 }
  0xfd   :  { %v397_v48 = vpop.f32.mrb[4].mxu0 }
  0xfe   :  { %v438_v19 = vpop.f32.mrb[4].mxu1  ;;  %v445_v49 = vmax.f32 %v186_v40, %v397_v48  ;;  %v399_v51 = vpop.f32.mrb[5].mxu0 }
  0xff   :  { %v447_v50 = vmax.f32 %v227_v41, %v438_v19  ;;  %v440_v52 = vpop.f32.mrb[5].mxu1  ;;  %v446_v53 = vmax.f32 %v188_v42, %v399_v51  ;;  %v401_v55 = vpop.f32.mrb[6].mxu0 }
 0x100   :  { %v448_v54 = vmax.f32 %v229_v43, %v440_v52  ;;  %v442_v56 = vpop.f32.mrb[6].mxu1  ;;  %v402_v57 = vpop.f32.mrb[7].mxu0 }
 0x101   :  { %v443_v30 = vpop.f32.mrb[7].mxu1 }
 0x111   :  { %v612_v58 = vpop.f32.mrb[8].mxu0 }
 0x112   :  { %v653_v59 = vpop.f32.mrb[8].mxu1  ;;  %v660_v60 = vmax.f32 %v445_v49, %v612_v58  ;;  %v614_v62 = vpop.f32.mrb[9].mxu0 }
 0x113   :  { %v662_v61 = vmax.f32 %v447_v50, %v653_v59  ;;  %v655_v63 = vpop.f32.mrb[9].mxu1  ;;  %v661_v0 = vmax.f32 %v446_v53, %v614_v62  ;;  %v616_v3 = vpop.f32.mrb[10].mxu0 }
 0x114   :  { %v663_v2 = vmax.f32 %v448_v54, %v655_v63  ;;  %v657_v4 = vpop.f32.mrb[10].mxu1  ;;  %v617_v5 = vpop.f32.mrb[11].mxu0 }
 0x115   :  { %v658_v6 = vpop.f32.mrb[11].mxu1 }
 0x125   :  { %v827_v8 = vpop.f32.mrb[12].mxu0 }
 0x126   :  { %v868_v9 = vpop.f32.mrb[12].mxu1  ;;  %v875_v10 = vmax.f32 %v660_v60, %v827_v8  ;;  %v829_v12 = vpop.f32.mrb[13].mxu0 }
 0x127   :  { %v877_v11 = vmax.f32 %v662_v61, %v868_v9  ;;  %v870_v13 = vpop.f32.mrb[13].mxu1  ;;  %v876_v14 = vmax.f32 %v661_v0, %v829_v12  ;;  %v831_v16 = vpop.f32.mrb[14].mxu0 }
 0x128   :  { %v878_v15 = vmax.f32 %v663_v2, %v870_v13  ;;  %v872_v17 = vpop.f32.mrb[14].mxu1  ;;  %v885_v18 = vadd.f32 %v883_v7, %v875_v10  ;;  %v832_v21 = vpop.f32.mrb[15].mxu0 }
 0x129   :  { %v887_v20 = vadd.f32 %v883_v7, %v877_v11  ;;  %v873_v22 = vpop.f32.mrb[15].mxu1  ;;  %v886_v23 = vadd.f32 %v883_v7, %v876_v14 }
 0x12a   :  { %v888_v24 = vadd.f32 %v883_v7, %v878_v15  ;;  %v889_v25 = vmax.f32 %v885_v18, 0.0 }
 0x12b   :  { %v891_v26 = vmax.f32 %v887_v20, 0.0  ;;  %v890_v27 = vmax.f32 %v886_v23, 0.0 }
 0x12c   :  { %v892_v28 = vmax.f32 %v888_v24, 0.0  ;;  %893 = vst [vmem:[%s1501_s3] sm:$0xff] %v889_v25 }
 0x12d   :  { %895 = vst [vmem:[%s1501_s3 + $0x10] sm:$0xff] %v891_v26  ;;  %894 = vst [vmem:[%s1501_s3 + $0x8] sm:$0xff] %v890_v27 }
 0x12e   :  { %897 = vst.msk [vmem:[%s1501_s3 + $0x18] sm:$0xff] %vm896_vm3, %v892_v28 }

// kernel: neural_net_forward.4
= control target key start
LH: loop header
LB: loop body
LE: loop exit
PB: predicated region body
PF: predicated region fallthrough
CT: control target
= control target key end

     0   :  { %v829_v0 = vmov 0   ;;  %vm126_vm0 = vcmask 588800   ;;  %vm130_vm1 = vcmask 1043456   ;;  %vm632_vm2 = vcmask 408576   ;;  %s1091_s0 = inlined_call_operand.vmem [shape: bf16[4,200,50], index: 0, kind: input, shape index: {}]   ;;  %s1092_s1 = inlined_call_operand.vmem [shape: bf16[16,200], index: 1, kind: input, shape index: {}]   ;;  %s1093_s2 = inlined_call_operand.vmem [shape: f32[16,1], index: 2, kind: input, shape index: {}]   ;;  %s1094_s3 = inlined_call_operand.vmem [shape: f32[16,50], index: 3, kind: output, shape index: {}]  }
   0x1   :  { %134 = vmatprep.subr.bf16.mxu0 %v829_v0  ;;  %279 = vmatprep.subr.bf16.mxu1 %v829_v0  ;;  %v774_v1 = vld [vmem:[%s1091_s0] sm:$0xff]   ;;  %v776_v3 = vld [vmem:[%s1091_s0 + $0x8] sm:$0xff]   ;;  %v778_v5 = vld [vmem:[%s1091_s0 + $0x10] sm:$0xff]  }
   0x2   :  { %v775_v2 = vld [vmem:[%s1091_s0 + $0x64] sm:$0xff]   ;;  %773 = vset.pattern.permute.xlu0 %v829_v0  ;;  %135 = vmatpush1.bf16.msra.mxu0 %v774_v1  ;;  %v777_v4 = vld [vmem:[%s1091_s0 + $0x6c] sm:$0xff]   ;;  %v779_v6 = vld [vmem:[%s1091_s0 + $0x74] sm:$0xff]  }
   0x3   :  { %280 = vmatpush1.bf16.msra.mxu1 %v775_v2  ;;  %136 = vmatprep.subr.bf16.mxu0 %v829_v0  ;;  %v780_v7 = vld [vmem:[%s1091_s0 + $0x18] sm:$0xff]   ;;  %v782_v9 = vld [vmem:[%s1091_s0 + $0x20] sm:$0xff]   ;;  %v784_v11 = vld [vmem:[%s1091_s0 + $0x28] sm:$0xff]  }
   0x4   :  { %281 = vmatprep.subr.bf16.mxu1 %v829_v0  ;;  %v781_v8 = vld [vmem:[%s1091_s0 + $0x7c] sm:$0xff]   ;;  %v783_v10 = vld [vmem:[%s1091_s0 + $0x84] sm:$0xff]   ;;  %v785_v12 = vld [vmem:[%s1091_s0 + $0x8c] sm:$0xff]  }
   0x5   :  { %v786_v13 = vld [vmem:[%s1091_s0 + $0x30] sm:$0xff]   ;;  %v788_v15 = vld [vmem:[%s1091_s0 + $0x38] sm:$0xff]   ;;  %v800_v16 = vld [vmem:[%s1092_s1 + $0x4] ss:$8 sps:$4 sm:$0xff]  }
   0x6   :  { %137 = vmatpush1.bf16.msra.mxu0 %v776_v3  ;;  %v787_v14 = vld [vmem:[%s1091_s0 + $0x94] sm:$0xff]   ;;  %v789_v17 = vld [vmem:[%s1091_s0 + $0x9c] sm:$0xff]   ;;  %654 = vmatprep.mubr.msk.bf16.mxu0 %vm126_vm0, %v800_v16  ;;  %v791_v19 = vld [vmem:[%s1091_s0 + $0xa4] sm:$0xff]  }
   0x7   :  { %282 = vmatpush1.bf16.msra.mxu1 %v777_v4  ;;  %138 = vmatprep.subr.bf16.mxu0 %v829_v0  ;;  %v790_v18 = vld [vmem:[%s1091_s0 + $0x40] sm:$0xff]   ;;  %v792_v20 = vld [vmem:[%s1091_s0 + $0x48] sm:$0xff]   ;;  %v794_v22 = vld [vmem:[%s1091_s0 + $0x50] sm:$0xff]  }
   0x8   :  { %283 = vmatprep.subr.bf16.mxu1 %v829_v0  ;;  %693 = vmatprep.mubr.msk.bf16.mxu1 %vm126_vm0, %v800_v16  ;;  %v793_v21 = vld [vmem:[%s1091_s0 + $0xac] sm:$0xff]   ;;  %v795_v23 = vld [vmem:[%s1091_s0 + $0xb4] sm:$0xff]   ;;  %v797_v25 = vld [vmem:[%s1091_s0 + $0xbc] sm:$0xff]  }
   0x9   :  { %v796_v24 = vld [vmem:[%s1091_s0 + $0x58] sm:$0xff]   ;;  %v798_v26 = vld [vmem:[%s1091_s0 + $0x60] ss:$0 sps:$4 sm:$0xff]   ;;  %v799_v27 = vld [vmem:[%s1091_s0 + $0xc4] ss:$0 sps:$4 sm:$0xff]  }
   0xa   :  { %139 = vmatpush1.bf16.msra.mxu0 %v778_v5  ;;  %v132_v28 = vsel %vm130_vm1, %v798_v26, 0  ;;  %v277_v29 = vsel %vm130_vm1, %v799_v27, 0  ;;  %v965_v30 = vld [vmem:[%s1092_s1] ss:$8 sps:$4 sm:$0xff]   ;;  %v804_v32 = vld [vmem:[%s1091_s0 + $0x12c] sm:$0xff]   ;;  %v806_v36 = vld [vmem:[%s1091_s0 + $0x134] sm:$0xff]  }
   0xb   :  { %284 = vmatpush1.bf16.msra.mxu1 %v779_v6  ;;  %140 = vmatprep.subr.bf16.mxu0 %v829_v0  ;;  %v803_v31 = vld [vmem:[%s1091_s0 + $0xc8] sm:$0xff]   ;;  %v616_v33 = vld [vmem:[%s1093_s2] sm:$0xff]  ;;  %v805_v34 = vld [vmem:[%s1091_s0 + $0xd0] sm:$0xff]  }
   0xc   :  { %285 = vmatprep.subr.bf16.mxu1 %v829_v0  ;;  %620 = vperm.xlu0 %773, %v616_v33   ;;  %v617_v35 = vld [vmem:[%s1093_s2 + $0x8] sm:$0xff]  ;;  %v807_v37 = vld [vmem:[%s1091_s0 + $0xd8] sm:$0xff]   ;;  %v809_v39 = vld [vmem:[%s1091_s0 + $0xe0] sm:$0xff]  }
   0xd   :  { %v808_v38 = vld [vmem:[%s1091_s0 + $0x13c] sm:$0xff]   ;;  %v810_v40 = vld [vmem:[%s1091_s0 + $0x144] sm:$0xff]   ;;  %v812_v42 = vld [vmem:[%s1091_s0 + $0x14c] sm:$0xff]  }
   0xe   :  { %141 = vmatpush1.bf16.msra.mxu0 %v780_v7  ;;  %v811_v41 = vld [vmem:[%s1091_s0 + $0xe8] sm:$0xff]   ;;  %v813_v43 = vld [vmem:[%s1091_s0 + $0xf0] sm:$0xff]   ;;  %v815_v45 = vld [vmem:[%s1091_s0 + $0xf8] sm:$0xff]  }
   0xf   :  { %286 = vmatpush1.bf16.msra.mxu1 %v781_v8  ;;  %142 = vmatprep.subr.bf16.mxu0 %v829_v0  ;;  %v814_v44 = vld [vmem:[%s1091_s0 + $0x154] sm:$0xff]   ;;  %v816_v46 = vld [vmem:[%s1091_s0 + $0x15c] sm:$0xff]   ;;  %v818_v48 = vld [vmem:[%s1091_s0 + $0x164] sm:$0xff]  }
  0x10   :  { %287 = vmatprep.subr.bf16.mxu1 %v829_v0  ;;  %625 = vperm.xlu0 %773, %v617_v35   ;;  %v817_v47 = vld [vmem:[%s1091_s0 + $0x100] sm:$0xff]   ;;  %v819_v49 = vld [vmem:[%s1091_s0 + $0x108] sm:$0xff]   ;;  %v821_v51 = vld [vmem:[%s1091_s0 + $0x110] sm:$0xff]  }
  0x11   :  { %v820_v50 = vld [vmem:[%s1091_s0 + $0x16c] sm:$0xff]   ;;  %v822_v52 = vld [vmem:[%s1091_s0 + $0x174] sm:$0xff]   ;;  %v824_v54 = vld [vmem:[%s1091_s0 + $0x17c] sm:$0xff]  }
  0x12   :  { %143 = vmatpush1.bf16.msra.mxu0 %v782_v9  ;;  %v823_v53 = vld [vmem:[%s1091_s0 + $0x118] sm:$0xff]   ;;  %v825_v55 = vld [vmem:[%s1091_s0 + $0x120] sm:$0xff]   ;;  %v827_v57 = vld [vmem:[%s1091_s0 + $0x128] ss:$0 sps:$4 sm:$0xff]  }
  0x13   :  { %288 = vmatpush1.bf16.msra.mxu1 %v783_v10  ;;  %144 = vmatprep.subr.bf16.mxu0 %v829_v0  ;;  %v826_v56 = vld [vmem:[%s1091_s0 + $0x184] sm:$0xff]   ;;  %v828_v58 = vld [vmem:[%s1091_s0 + $0x18c] ss:$0 sps:$4 sm:$0xff]   ;;  %v424_v59 = vsel %vm130_vm1, %v827_v57, 0 }
  0x14   :  { %289 = vmatprep.subr.bf16.mxu1 %v829_v0  ;;  %v571_v60 = vsel %vm130_vm1, %v828_v58, 0 }
  0x16   :  { %145 = vmatpush1.bf16.msra.mxu0 %v784_v11 }
  0x17   :  { %290 = vmatpush1.bf16.msra.mxu1 %v785_v12  ;;  %146 = vmatprep.subr.bf16.mxu0 %v829_v0 }
  0x18   :  { %291 = vmatprep.subr.bf16.mxu1 %v829_v0 }
  0x1a   :  { %147 = vmatpush1.bf16.msra.mxu0 %v786_v13 }
  0x1b   :  { %292 = vmatpush1.bf16.msra.mxu1 %v787_v14  ;;  %148 = vmatprep.subr.bf16.mxu0 %v829_v0 }
  0x1c   :  { %293 = vmatprep.subr.bf16.mxu1 %v829_v0 }
  0x1e   :  { %149 = vmatpush1.bf16.msra.mxu0 %v788_v15 }
  0x1f   :  { %294 = vmatpush1.bf16.msra.mxu1 %v789_v17  ;;  %150 = vmatprep.subr.bf16.mxu0 %v829_v0 }
  0x20   :  { %295 = vmatprep.subr.bf16.mxu1 %v829_v0 }
  0x22   :  { %151 = vmatpush1.bf16.msra.mxu0 %v790_v18 }
  0x23   :  { %296 = vmatpush1.bf16.msra.mxu1 %v791_v19  ;;  %152 = vmatprep.subr.bf16.mxu0 %v829_v0 }
  0x24   :  { %297 = vmatprep.subr.bf16.mxu1 %v829_v0 }
  0x26   :  { %153 = vmatpush1.bf16.msra.mxu0 %v792_v20 }
  0x27   :  { %298 = vmatpush1.bf16.msra.mxu1 %v793_v21  ;;  %154 = vmatprep.subr.bf16.mxu0 %v829_v0 }
  0x28   :  { %299 = vmatprep.subr.bf16.mxu1 %v829_v0 }
  0x2a   :  { %155 = vmatpush1.bf16.msra.mxu0 %v794_v22 }
  0x2b   :  { %300 = vmatpush1.bf16.msra.mxu1 %v795_v23  ;;  %156 = vmatprep.subr.bf16.mxu0 %v829_v0 }
  0x2c   :  { %301 = vmatprep.subr.bf16.mxu1 %v829_v0 }
  0x2e   :  { %157 = vmatpush1.bf16.msra.mxu0 %v796_v24 }
  0x2f   :  { %302 = vmatpush1.bf16.msra.mxu1 %v797_v25  ;;  %158 = vmatprep.subr.bf16.mxu0 %v829_v0 }
  0x30   :  { %303 = vmatprep.subr.bf16.mxu1 %v829_v0 }
  0x32   :  { %159 = vmatpush1.bf16.msra.mxu0 %v132_v28 }
  0x33   :  { %304 = vmatpush1.bf16.msra.mxu1 %v277_v29  ;;  %426 = vmatprep.subr.bf16.mxu0 %v829_v0 }
  0x34   :  { %573 = vmatprep.subr.bf16.mxu1 %v829_v0 }
  0x35   :  { %167 = vmatmul.mubr.bf16.vlgmr.msra.gmra.mrb[0].mxu0 %v965_v30 }
  0x36   :  { %312 = vmatmul.mubr.bf16.vlgmr.msra.gmra.mrb[0].mxu1 %v965_v30  ;;  %427 = vmatpush1.bf16.msra.mxu0 %v803_v31 }
  0x37   :  { %574 = vmatpush1.bf16.msra.mxu1 %v804_v32  ;;  %428 = vmatprep.subr.bf16.mxu0 %v829_v0 }
  0x38   :  { %575 = vmatprep.subr.bf16.mxu1 %v829_v0  ;;  %732 = vmatprep.mubr.msk.bf16.mxu0 %vm126_vm0, %v800_v16 }
  0x39   :  { %771 = vmatprep.mubr.msk.bf16.mxu1 %vm126_vm0, %v800_v16 }
  0x3a   :  { %429 = vmatpush1.bf16.msra.mxu0 %v805_v34 }
  0x3b   :  { %576 = vmatpush1.bf16.msra.mxu1 %v806_v36  ;;  %430 = vmatprep.subr.bf16.mxu0 %v829_v0 }
  0x3c   :  { %577 = vmatprep.subr.bf16.mxu1 %v829_v0 }
  0x3e   :  { %431 = vmatpush1.bf16.msra.mxu0 %v807_v37 }
  0x3f   :  { %578 = vmatpush1.bf16.msra.mxu1 %v808_v38  ;;  %432 = vmatprep.subr.bf16.mxu0 %v829_v0 }
  0x40   :  { %579 = vmatprep.subr.bf16.mxu1 %v829_v0 }
  0x42   :  { %433 = vmatpush1.bf16.msra.mxu0 %v809_v39 }
  0x43   :  { %580 = vmatpush1.bf16.msra.mxu1 %v810_v40  ;;  %434 = vmatprep.subr.bf16.mxu0 %v829_v0 }
  0x44   :  { %581 = vmatprep.subr.bf16.mxu1 %v829_v0 }
  0x46   :  { %435 = vmatpush1.bf16.msra.mxu0 %v811_v41 }
  0x47   :  { %582 = vmatpush1.bf16.msra.mxu1 %v812_v42  ;;  %436 = vmatprep.subr.bf16.mxu0 %v829_v0 }
  0x48   :  { %583 = vmatprep.subr.bf16.mxu1 %v829_v0 }
  0x4a   :  { %437 = vmatpush1.bf16.msra.mxu0 %v813_v43 }
  0x4b   :  { %584 = vmatpush1.bf16.msra.mxu1 %v814_v44  ;;  %438 = vmatprep.subr.bf16.mxu0 %v829_v0 }
  0x4c   :  { %585 = vmatprep.subr.bf16.mxu1 %v829_v0 }
  0x4e   :  { %439 = vmatpush1.bf16.msra.mxu0 %v815_v45 }
  0x4f   :  { %586 = vmatpush1.bf16.msra.mxu1 %v816_v46  ;;  %440 = vmatprep.subr.bf16.mxu0 %v829_v0 }
  0x50   :  { %587 = vmatprep.subr.bf16.mxu1 %v829_v0 }
  0x52   :  { %441 = vmatpush1.bf16.msra.mxu0 %v817_v47 }
  0x53   :  { %588 = vmatpush1.bf16.msra.mxu1 %v818_v48  ;;  %442 = vmatprep.subr.bf16.mxu0 %v829_v0 }
  0x54   :  { %589 = vmatprep.subr.bf16.mxu1 %v829_v0 }
  0x56   :  { %443 = vmatpush1.bf16.msra.mxu0 %v819_v49 }
  0x57   :  { %590 = vmatpush1.bf16.msra.mxu1 %v820_v50  ;;  %444 = vmatprep.subr.bf16.mxu0 %v829_v0 }
  0x58   :  { %591 = vmatprep.subr.bf16.mxu1 %v829_v0 }
  0x5a   :  { %445 = vmatpush1.bf16.msra.mxu0 %v821_v51 }
  0x5b   :  { %592 = vmatpush1.bf16.msra.mxu1 %v822_v52  ;;  %446 = vmatprep.subr.bf16.mxu0 %v829_v0 }
  0x5c   :  { %593 = vmatprep.subr.bf16.mxu1 %v829_v0 }
  0x5e   :  { %447 = vmatpush1.bf16.msra.mxu0 %v823_v53 }
  0x5f   :  { %594 = vmatpush1.bf16.msra.mxu1 %v824_v54  ;;  %448 = vmatprep.subr.bf16.mxu0 %v829_v0 }
  0x60   :  { %595 = vmatprep.subr.bf16.mxu1 %v829_v0 }
  0x62   :  { %449 = vmatpush1.bf16.msra.mxu0 %v825_v55 }
  0x63   :  { %596 = vmatpush1.bf16.msra.mxu1 %v826_v56  ;;  %450 = vmatprep.subr.bf16.mxu0 %v829_v0 }
  0x64   :  { %597 = vmatprep.subr.bf16.mxu1 %v829_v0 }
  0x66   :  { %451 = vmatpush1.bf16.msra.mxu0 %v424_v59 }
  0x67   :  { %598 = vmatpush1.bf16.msra.mxu1 %v571_v60 }
  0x69   :  { %459 = vmatmul.mubr.bf16.vlgmr.msra.gmra.mrb[4].mxu0 %v965_v30 }
  0x6a   :  { %606 = vmatmul.mubr.bf16.vlgmr.msra.gmra.mrb[4].mxu1 %v965_v30 }
  0x8b   :  { %v621_v8 = vpop.permute.xlu0 %620 }
  0x8f   :  { %v626_v21 = vpop.permute.xlu0 %625 }
 0x108   :  { %v168_v61 = vpop.f32.mrb[0].mxu0 }
 0x109   :  { %v313_v62 = vpop.f32.mrb[0].mxu1  ;;  %v170_v63 = vpop.f32.mrb[1].mxu0 }
 0x10a   :  { %v320_v1 = vmax.f32 %v168_v61, %v313_v62  ;;  %v315_v2 = vpop.f32.mrb[1].mxu1  ;;  %v171_v3 = vpop.f32.mrb[2].mxu0 }
 0x10b   :  { %v316_v4 = vpop.f32.mrb[2].mxu1  ;;  %v173_v5 = vpop.f32.mrb[3].mxu0 }
 0x10c   :  { %v321_v6 = vmax.f32 %v171_v3, %v316_v4  ;;  %v318_v7 = vpop.f32.mrb[3].mxu1 }
 0x13c   :  { %v460_v0 = vpop.f32.mrb[4].mxu0 }
 0x13d   :  { %v467_v9 = vmax.f32 %v320_v1, %v460_v0  ;;  %v607_v10 = vpop.f32.mrb[4].mxu1  ;;  %v462_v11 = vpop.f32.mrb[5].mxu0 }
 0x13e   :  { %v609_v12 = vpop.f32.mrb[5].mxu1  ;;  %v463_v13 = vpop.f32.mrb[6].mxu0 }
 0x13f   :  { %v614_v14 = vmax.f32 %v467_v9, %v607_v10  ;;  %v468_v15 = vmax.f32 %v321_v6, %v463_v13  ;;  %v610_v16 = vpop.f32.mrb[6].mxu1  ;;  %v465_v17 = vpop.f32.mrb[7].mxu0 }
 0x140   :  { %v612_v18 = vpop.f32.mrb[7].mxu1 }
 0x141   :  { %v628_v19 = vadd.f32 %v621_v8, %v614_v14  ;;  %v615_v20 = vmax.f32 %v468_v15, %v610_v16 }
 0x143   :  { %v630_v22 = vmax.f32 %v628_v19, 0.0  ;;  %v629_v23 = vadd.f32 %v626_v21, %v615_v20 }
 0x145   :  { %633 = vst.msk [vmem:[%s1094_s3] sm:$0xff] %vm632_vm2, %v630_v22  ;;  %v631_v24 = vmax.f32 %v629_v23, 0.0 }
 0x147   :  { %634 = vst.msk [vmem:[%s1094_s3 + $0x8] sm:$0xff] %vm632_vm2, %v631_v24 }

// kernel: neural_net_forward.5
= control target key start
LH: loop header
LB: loop body
LE: loop exit
PB: predicated region body
PF: predicated region fallthrough
CT: control target
= control target key end

     0   :  { %v770_v1 = vmov 0   ;;  %v98_v20 = vlaneseq  ;;  %v771_v25 = vmov 1966171168   ;;  %vm264_vm0 = vcmask 130048   ;;  %s981_s0 = inlined_call_operand.vmem [shape: bf16[2,400], index: 0, kind: input, shape index: {}]   ;;  %s982_s1 = inlined_call_operand.vmem [shape: bf16[400,120], index: 1, kind: input, shape index: {}]   ;;  %s983_s2 = inlined_call_operand.vmem [shape: f32[1,120], index: 2, kind: input, shape index: {}]   ;;  %s984_s3 = inlined_call_operand.vmem [shape: bf16[120,84], index: 3, kind: input, shape index: {}]   ;;  %s985_s4 = inlined_call_operand.vmem [shape: f32[1,84], index: 4, kind: input, shape index: {}]   ;;  %s986_s5 = inlined_call_operand.vmem [shape: bf16[84,10], index: 5, kind: input, shape index: {}]   ;;  %s987_s6 = inlined_call_operand.vmem [shape: f32[1,10], index: 6, kind: input, shape index: {}]   ;;  %s988_s7 = inlined_call_operand.hbm [shape: f32[2,10], index: 7, kind: output, shape index: {}]  }
   0x1   :  { %v707_v0 = vld [vmem:[%s982_s1 + $0x40] sm:$0xff]   ;;  %308 = vmatprep.subr.bf16.mxu1 %v770_v1  ;;  %v710_v4 = vld [vmem:[%s982_s1 + $0x48] sm:$0xff]   ;;  %v713_v7 = vld [vmem:[%s982_s1 + $0x50] sm:$0xff]   ;;  %v96_v26 = vunpack.c.l.s4 %v771_v25  ;;  %v772_v38 = vmov 0.0  }
   0x2   :  { %v708_v2 = vld [vmem:[%s982_s1 + $0x80] sm:$0xff]   ;;  %628 = vmatprep.subr.bf16.mxu0 %v707_v0  ;;  %v711_v5 = vld [vmem:[%s982_s1 + $0x88] sm:$0xff]   ;;  %v714_v8 = vld [vmem:[%s982_s1 + $0x90] sm:$0xff]   ;;  %v99_v27 = vshrl.u32 %v98_v20, 7 }
   0x3   :  { %v709_v3 = vld [vmem:[%s982_s1] sm:$0xff]   ;;  %309 = vmatpush1.bf16.msra.mxu1 %v708_v2  ;;  %v712_v6 = vld [vmem:[%s982_s1 + $0x8] sm:$0xff]   ;;  %v715_v9 = vld [vmem:[%s982_s1 + $0x10] sm:$0xff]   ;;  %v97_v30 = vunpack.c.0.s8 %v96_v26 }
   0x4   :  { %629 = vmatpush3.bf16.msra.mxu0 %v709_v3  ;;  %310 = vmatprep.subr.bf16.mxu1 %v770_v1  ;;  %v716_v10 = vld [vmem:[%s982_s1 + $0x58] sm:$0xff]   ;;  %v719_v13 = vld [vmem:[%s982_s1 + $0x60] sm:$0xff]   ;;  %v722_v16 = vld [vmem:[%s982_s1 + $0x68] sm:$0xff]  }
   0x5   :  { %630 = vmatprep.subr.bf16.mxu0 %v710_v4  ;;  %v717_v11 = vld [vmem:[%s982_s1 + $0x98] sm:$0xff]   ;;  %v720_v14 = vld [vmem:[%s982_s1 + $0xa0] sm:$0xff]   ;;  %v723_v17 = vld [vmem:[%s982_s1 + $0xa8] sm:$0xff]   ;;  %v100_v32 = vsub.s32 %v97_v30, %v99_v27 }
   0x6   :  { %v718_v12 = vld [vmem:[%s982_s1 + $0x18] sm:$0xff]   ;;  %v721_v15 = vld [vmem:[%s982_s1 + $0x20] sm:$0xff]   ;;  %v724_v18 = vld [vmem:[%s982_s1 + $0x28] sm:$0xff]  }
   0x7   :  { %311 = vmatpush1.bf16.msra.mxu1 %v711_v5  ;;  %v725_v19 = vld [vmem:[%s982_s1 + $0x70] sm:$0xff]   ;;  %v583_v23 = vld.sshfl [vmem:[%s981_s0] sm:$0x33 pattern:$0x75316420]  ;;  %v728_v24 = vld [vmem:[%s982_s1 + $0x78] sm:$0xff]  }
   0x8   :  { %631 = vmatpush3.bf16.msra.mxu0 %v712_v6  ;;  %312 = vmatprep.subr.bf16.mxu1 %v770_v1  ;;  %v726_v21 = vld [vmem:[%s982_s1 + $0xb0] sm:$0xff]   ;;  %v729_v28 = vld [vmem:[%s982_s1 + $0xb8] sm:$0xff]   ;;  %v94_v29 = vcombine.high %v583_v23, %v583_v23  ;;  %v731_v33 = vld [vmem:[%s982_s1 + $0xc0] sm:$0xff]   ;;  %v101_v36 = vrot.slane %v583_v23, %v100_v32 }
   0x9   :  { %632 = vmatprep.subr.bf16.mxu0 %v713_v7  ;;  %v727_v22 = vld [vmem:[%s982_s1 + $0x30] sm:$0xff]   ;;  %v730_v31 = vld [vmem:[%s982_s1 + $0x38] sm:$0xff]   ;;  %v732_v34 = vld [vmem:[%s984_s3] sm:$0xff]  }
   0xa   :  { %v108_v35 = vrot.slane %v94_v29, %v100_v32  ;;  %v109_v39 = vcombine.high %v101_v36, %v101_v36  ;;  %v733_v40 = vld [vmem:[%s984_s3 + $0x8] sm:$0xff]  }
   0xb   :  { %313 = vmatpush1.bf16.msra.mxu1 %v714_v8 }
   0xc   :  { %633 = vmatpush3.bf16.msra.mxu0 %v715_v9  ;;  %314 = vmatprep.subr.bf16.mxu1 %v770_v1  ;;  %v110_v37 = vcombine.high %v108_v35, %v108_v35 }
   0xd   :  { %634 = vmatprep.subr.bf16.mxu0 %v716_v10  ;;  %300 = vmatprep.mubr.bf16.mxu0 %v108_v35 }
   0xe   :  { %609 = vmatprep.mubr.msk.bf16.mxu1 %vm264_vm0, %v110_v37 }
   0xf   :  { %315 = vmatpush1.bf16.msra.mxu1 %v717_v11 }
  0x10   :  { %635 = vmatpush3.bf16.msra.mxu0 %v718_v12  ;;  %316 = vmatprep.subr.bf16.mxu1 %v770_v1 }
  0x11   :  { %636 = vmatprep.subr.bf16.mxu0 %v719_v13 }
  0x13   :  { %317 = vmatpush1.bf16.msra.mxu1 %v720_v14 }
  0x14   :  { %637 = vmatpush3.bf16.msra.mxu0 %v721_v15  ;;  %318 = vmatprep.subr.bf16.mxu1 %v770_v1 }
  0x15   :  { %638 = vmatprep.subr.bf16.mxu0 %v722_v16 }
  0x17   :  { %319 = vmatpush1.bf16.msra.mxu1 %v723_v17 }
  0x18   :  { %639 = vmatpush3.bf16.msra.mxu0 %v724_v18  ;;  %320 = vmatprep.subr.bf16.mxu1 %v770_v1 }
  0x19   :  { %640 = vmatprep.subr.bf16.mxu0 %v725_v19 }
  0x1b   :  { %321 = vmatpush1.bf16.msra.mxu1 %v726_v21 }
  0x1c   :  { %641 = vmatpush3.bf16.msra.mxu0 %v727_v22  ;;  %322 = vmatprep.subr.bf16.mxu1 %v770_v1 }
  0x1d   :  { %642 = vmatprep.subr.bf16.mxu0 %v728_v24 }
  0x1f   :  { %323 = vmatpush1.bf16.msra.mxu1 %v729_v28 }
  0x20   :  { %643 = vmatpush3.bf16.msra.mxu0 %v730_v31  ;;  %324 = vmatprep.subr.bf16.mxu1 %v770_v1 }
  0x21   :  { %666 = vmatprep.subr.bf16.mxu0 %v772_v38 }
  0x23   :  { %301 = vmatmul.mubr.bf16.vlgmr.msra.gmra.mrb[0].mxu0 %v101_v36  ;;  %325 = vmatpush1.bf16.msra.mxu1 %v731_v33 }
  0x24   :  { %667 = vmatpush3.bf16.msra.mxu0 %v732_v34 }
  0x25   :  { %12 = vsyncpa [#allocation3], 0  ;;  %668 = vmatprep.subr.bf16.mxu0 %v772_v38  ;;  %686 = vmatprep.subr.bf16.mxu1 %v772_v38  ;;  %v734_v41 = vld [vmem:[%s984_s3 + $0x10] sm:$0xff]   ;;  %v735_v42 = vld [vmem:[%s984_s3 + $0x18] sm:$0xff]   ;;  %vm421_vm1 = vcmask 1043456   ;;  %vm773_vm2 = vmmov 0  }
  0x26   :  { %341 = vmatmul.mubr.bf16.vlgmr.msra.gmra.mrb[0].mxu1 %v109_v39  ;;  %v736_v43 = vld [vmem:[%s984_s3 + $0x20] sm:$0xff]   ;;  %v737_v44 = vld [vmem:[%s984_s3 + $0x28] sm:$0xff]   ;;  %v738_v45 = vld [vmem:[%s984_s3 + $0x30] sm:$0xff]   ;;  %682 = vmatprep.mubr.msk.bf16.mxu0 %vm773_vm2, %v772_v38  ;;  %vm417_vm3 = vcmask 982016   ;;  %vm522_vm4 = vcmask 1041408   ;;  %vm518_vm5 = vcmask 687104  }
  0x27   :  { %v739_v46 = vld [vmem:[%s984_s3 + $0x38] ss:$0 sps:$4 sm:$0xff]   ;;  %698 = vmatprep.mubr.msk.bf16.mxu1 %vm773_vm2, %v772_v38  ;;  %v740_v48 = vld [vmem:[%s986_s5] sm:$0xff]   ;;  %v741_v49 = vld [vmem:[%s986_s5 + $0x8] sm:$0xff]   ;;  %vm566_vm6 = vcmask 74752  }
  0x28   :  { %669 = vmatpush3.bf16.msra.mxu0 %v733_v40  ;;  %v423_v47 = vsel %vm421_vm1, %v739_v46, 0  ;;  %687 = vmatpush3.bf16.msra.mxu1 %v740_v48  ;;  %v742_v50 = vld [vmem:[%s986_s5 + $0x10] sm:$0xff]   ;;  %v743_v51 = vld [vmem:[%s986_s5 + $0x18] sm:$0xff]   ;;  %v582_v54 = vld [vmem:[%s983_s2] ss:$0 sm:$0xff] }
  0x29   :  { %670 = vmatprep.subr.bf16.mxu0 %v772_v38  ;;  %688 = vmatprep.subr.bf16.mxu1 %v772_v38  ;;  %v744_v2 = vld [vmem:[%s986_s5 + $0x20] sm:$0xff]   ;;  %v745_v3 = vld [vmem:[%s986_s5 + $0x28] ss:$0 sps:$4 sm:$0x33]   ;;  %s774_s5 = smov [#allocation2]  }
  0x2a   :  { %v524_v4 = vsel %vm522_vm4, %v745_v3, 0  ;;  %v610_v5 = vld [vmem:[%s985_s4] ss:$0 sm:$0xff]  ;;  %s574_s12 = sshll.u32 %s774_s5, 4  ;;  %s575_s12 = int_to_ptr.vmem [resolvable:$true] %s574_s12 }
  0x2b   :  { %v620_v13 = vld [vmem:[%s987_s6] ss:$0 sm:$0xff]  ;;  %s746_s4 = scalar_lea.vmem %s575_s12, 32  ;;  %p751_p1 = scmp.lt.s32.totalorder %s575_s12, %s575_s12 }
  0x2c   :  { %671 = vmatpush3.bf16.msra.mxu0 %v734_v41  ;;  %689 = vmatpush3.bf16.msra.mxu1 %v741_v49  ;;  %p747_p0 = scmp.ne.s32.totalorder %s575_s12, %s746_s4  ;;  %p752_p2 = scmp.lt.s32.totalorder %s746_s4, %s746_s4 }
  0x2d   :  { %672 = vmatprep.subr.bf16.mxu0 %v772_v38  ;;  %690 = vmatprep.subr.bf16.mxu1 %v772_v38 }
  0x2e   :  { %p753_p3 = por %p752_p2, %p751_p1 }
  0x30   :  { %673 = vmatpush3.bf16.msra.mxu0 %v735_v42  ;;  %691 = vmatpush3.bf16.msra.mxu1 %v742_v50  ;;  %p754_p4 = pnand %p753_p3, %p747_p0 }
  0x31   :  { %674 = vmatprep.subr.bf16.mxu0 %v772_v38  ;;  %692 = vmatprep.subr.bf16.mxu1 %v772_v38 }
  0x34   :  { %675 = vmatpush3.bf16.msra.mxu0 %v736_v43  ;;  %693 = vmatpush3.bf16.msra.mxu1 %v743_v51 }
  0x35   :  { %676 = vmatprep.subr.bf16.mxu0 %v772_v38  ;;  %694 = vmatprep.subr.bf16.mxu1 %v772_v38 }
  0x38   :  { %677 = vmatpush3.bf16.msra.mxu0 %v737_v44  ;;  %695 = vmatpush3.bf16.msra.mxu1 %v744_v2 }
  0x39   :  { %678 = vmatprep.subr.bf16.mxu0 %v772_v38  ;;  %696 = vmatprep.subr.bf16.mxu1 %v772_v38 }
  0x3c   :  { %679 = vmatpush3.bf16.msra.mxu0 %v738_v45  ;;  %697 = vmatpush3.bf16.msra.mxu1 %v524_v4 }
  0x3d   :  { %680 = vmatprep.subr.bf16.mxu0 %v772_v38 }
  0x40   :  { %681 = vmatpush3.bf16.msra.mxu0 %v423_v47 }
  0xf6   :  { %v644_v52 = vpop.f32.mrb[0].mxu0 }
  0xf7   :  { %v645_v53 = vpop.f32.mrb[1].mxu0 }
  0xf8   :  { %v646_v55 = vadd.f32 %v645_v53, %v644_v52  ;;  %v647_v56 = vpop.f32.mrb[2].mxu0 }
  0xf9   :  { %v648_v57 = vpop.f32.mrb[3].mxu0  ;;  %v342_v58 = vpop.f32.mrb[0].mxu1 }
  0xfa   :  { %v303_v59 = vadd.f32 %v646_v55, %v582_v54  ;;  %v344_v60 = vpop.f32.mrb[1].mxu1 }
  0xfb   :  { %v345_v61 = vpop.f32.mrb[2].mxu1 }
  0xfc   :  { %v343_v62 = vadd.f32 %v342_v58, %v303_v59  ;;  %v346_v63 = vpop.f32.mrb[3].mxu1 }
  0xfe   :  { %v348_v0 = vmax.f32 %v343_v62, 0.0 }
 0x100   :  { %v349_v1 = vpack.c.bf16 %v348_v0, %v348_v0 }
 0x102   :  { %683 = vmatmul.mubr.msk.bf16.vlgmr.msra.gmra.mrb[4].mxu0 %vm417_vm3, %v349_v1 }
 0x1d5   :  { %v459_v6 = vpop.f32.mrb[4].mxu0 }
 0x1d6   :  { %v460_v7 = vadd.f32 %v610_v5, %v459_v6  ;;  %v684_v8 = vpop.f32.mrb[5].mxu0 }
 0x1d7   :  { %v462_v9 = vpop.f32.mrb[6].mxu0 }
 0x1d8   :  { %v465_v10 = vmax.f32 %v460_v7, 0.0  ;;  %v685_v11 = vpop.f32.mrb[7].mxu0 }
 0x1da   :  { %v466_v12 = vpack.c.bf16 %v465_v10, %v465_v10 }
 0x1dc   :  { %699 = vmatmul.mubr.msk.bf16.vlgmr.msra.gmra.mrb[4].mxu1 %vm518_vm5, %v466_v12 }
 0x2af   :  { %v560_v14 = vpop.f32.mrb[4].mxu1 }
 0x2b0   :  { %v561_v15 = vadd.f32 %v620_v13, %v560_v14  ;;  %v700_v16 = vpop.f32.mrb[5].mxu1 }
 0x2b1   :  { %v563_v17 = vpop.f32.mrb[6].mxu1 }
 0x2b2   :  { %v701_v18 = vpop.f32.mrb[7].mxu1  ;;  %567 = vst.msk [vmem:[#allocation2] sm:$0x3] %vm566_vm6, %v561_v15 }
 0x2b3   :  { %757 = shalt.err (!%p754_p4)
}
 0x2b4   :  { %s758_s6 = scalar_lea.hbm %s988_s7, 32 }
 0x2b5   :  { %p759_p5 = scmp.ne.s32.totalorder %s988_s7, %s758_s6  ;;  %p762_p6 = scmp.lt.u32.totalorder %s758_s6, %s988_s7 }
 0x2b7   :  { %p764_p7 = pnand %p762_p6, %p759_p5 }
 0x2b9   :  { %767 = shalt.err (!%p764_p7)
}
 0x2ba   :  { %577 = dma.vmem_to_hbm [thread:$0]  %s575_s12, 32, %s988_s7, [#allocation3]  }
 0x2bb   :  { %768 = dma.done.wait [#allocation3], 32  }
 0x2bc   :  { %769 = vsyncadd [#allocation3], 4294967264 }
 0x2bd   :  { %581 = vsyncpa [#allocation3], 1 }

</bundles_post_ra>
